<compile_context>
chip_gen: v7x
topology: tpu7x:2x2x1
jax: 0.10.0
libtpu: 0.0.40
codegen_flags: <defaults>
</compile_context>

<pallas_src>
import jax
import jax.numpy as jnp
from jax import lax
from jax.experimental import pallas as pl
from jax.experimental.pallas import tpu as pltpu

N = 12          # number of neurons (module default)
N_PAD = 128     # lane-padded width
P_ROWS = 16     # padded parameter-slab rows (9 used)
S_ROWS = 8      # padded state-slab rows (4 used)
CHUNK = 8       # timesteps per full (8,128) spike-tile store

# rows of the packed derived-parameter block
_P_EL, _P_A, _P_B, _P_FV, _P_FI, _P_DTH, _P_OMB, _P_DV, _P_ITG = range(9)
# rows of the packed state block
_S_V, _S_G, _S_TH, _S_IA = range(4)


def _lif_kernel(x_ref, w_ref, p_ref, s0_ref, spk_ref, s_ref):
    # Seed the resident state slab (output block, constant index map) from the
    # provided initial state on the first grid step only.
    @pl.when(pl.program_id(0) == 0)
    def _init():
        s_ref[...] = s0_ref[...]

    # ---- loop-invariant unpack (each a (1, N_PAD) row) ----------------------
    E_L  = p_ref[_P_EL:_P_EL + 1, :]
    a    = p_ref[_P_A:_P_A + 1, :]      # G / tau_m
    b    = p_ref[_P_B:_P_B + 1, :]      # norm_R / tau_m
    f_v  = p_ref[_P_FV:_P_FV + 1, :]
    f_I  = p_ref[_P_FI:_P_FI + 1, :]
    d_th = p_ref[_P_DTH:_P_DTH + 1, :]
    omb  = p_ref[_P_OMB:_P_OMB + 1, :]  # 1 - b_s
    d_V  = p_ref[_P_DV:_P_DV + 1, :]
    itg  = p_ref[_P_ITG:_P_ITG + 1, :]  # 1 / tau_g
    W    = w_ref[...]                   # (N_PAD, N_PAD) effective weights
    # TODO(synk): latch W in MXU weight registers across the block via
    # pltpu.matmul_push_rhs / matmul_acc_lhs / matmul_pop once that explicit
    # path is validated, to avoid re-streaming the RHS on every per-step dot.

    t_blk = x_ref.shape[0]
    n_chunks = t_blk // CHUNK

    # State lives in vregs for the whole block; s_ref is only touched here and
    # at the end of the block.
    v0  = s_ref[_S_V:_S_V + 1, :]
    g0  = s_ref[_S_G:_S_G + 1, :]
    th0 = s_ref[_S_TH:_S_TH + 1, :]
    ia0 = s_ref[_S_IA:_S_IA + 1, :]

    def chunk_body(c, carry):
        v, g, theta, I_add = carry
        base = pl.multiple_of(c * CHUNK, CHUNK)
        x_chunk = x_ref[pl.ds(base, CHUNK), :]          # (CHUNK, N_PAD), one load
        rows = []
        for j in range(CHUNK):                          # static inner unroll of 8
            x = x_chunk[j:j + 1, :]                     # (1, N_PAD)

            # Recurrent drive: ((I_additive + g)/2) @ W_eff + 1.75 * x
            pre = (I_add + g) * 0.5
            I_tot = jnp.dot(pre, W, preferred_element_type=jnp.float32) + 1.75 * x

            # Membrane dynamics (== (G*(E_L-v) + I_tot*norm_R)/tau_m)
            dv = a * (E_L - v) + I_tot * b
            v_next = v + dv

            rows.append(jnp.maximum(v_next - theta, 0.0))   # soft ReLU spike

            spiked = (v_next >= theta).astype(jnp.float32)
            not_spiked = 1.0 - spiked

            v_reset = E_L + f_v * (v - E_L) - d_V
            v     = spiked * v_reset + not_spiked * v_next
            theta = omb * theta + spiked * d_th
            I_add = I_add - f_I * I_add + spiked * f_I
            g     = spiked + not_spiked * (g - g * itg)

        # One unmasked (8,128) tile store per 8 steps (no per-step vst.msk RMW).
        spk_ref[pl.ds(base, CHUNK), :] = jnp.concatenate(rows, axis=0)
        return (v, g, theta, I_add)

    v, g, theta, I_add = lax.fori_loop(0, n_chunks, chunk_body,
                                       (v0, g0, th0, ia0))

    # Single full-tile state writeback per grid step.
    pad_rows = jnp.zeros((S_ROWS - 4, N_PAD), jnp.float32)
    s_ref[...] = jnp.concatenate([v, g, theta, I_add, pad_rows], axis=0)


def _pick_tblk(T, max_blk=512):
    """Largest multiple-of-8 block of timesteps per grid step (whole T if small)."""
    if T <= max_blk:
        return T
    cap = max_blk - (max_blk % CHUNK)
    for cand in range(cap, CHUNK - 1, -CHUNK):
        if T % cand == 0:
            return cand
    return CHUNK


def lif_forward_sequence(x_seq, w, nt_mat, mask, params, state):
    """Run T forward steps of LIF_R_ASC_soft_ReLu in one fused Pallas kernel.

    x_seq : (T, N) input current per step (T must be a multiple of 8).
    w, nt_mat, mask : (N, N).
    params : (10, N) raw stack [E_L, tau_m, G, f_v, f_I, d_th_s, b_s, d_V, tau_g, norm_R].
    state  : (4, N) [v, g, theta_s, I_additive].
    Returns (spiked_relu (T, N), new_state (4, N)).
    """
    T = x_seq.shape[0]
    # TODO(synk): support ragged T via a masked tail chunk; callers pad to 8 for now.
    assert T % CHUNK == 0, "pad T to a multiple of 8"
    t_blk = _pick_tblk(T)

    E_L, tau_m, G, f_v, f_I, d_th, b_s, d_V, tau_g, norm_R = [params[i] for i in range(10)]

    # Loop-invariant derived constants (hoisted out of the per-step path).
    derived = jnp.stack([
        E_L,
        G / tau_m,
        norm_R / tau_m,
        f_v,
        f_I,
        d_th,
        1.0 - b_s,
        d_V,
        1.0 / tau_g,
    ]).astype(jnp.float32)                                   # (9, N)

    # Hoisted effective weight matrix (mask * w * neuron_types), lane/sublane padded.
    W_eff = (mask * w * nt_mat).astype(jnp.float32)

    # Padded lanes 12..127 are made inert: omb=1 and theta_init=+1e30 so they
    # can never satisfy v_next >= theta (no spurious spikes / g saturation).
    p_blk = jnp.zeros((P_ROWS, N_PAD), jnp.float32)
    p_blk = p_blk.at[_P_OMB, :].set(1.0)
    p_blk = p_blk.at[:9, :N].set(derived)

    w_pad = jnp.zeros((N_PAD, N_PAD), jnp.float32).at[:N, :N].set(W_eff)

    s0 = jnp.zeros((S_ROWS, N_PAD), jnp.float32)
    s0 = s0.at[_S_TH, :].set(1e30)
    s0 = s0.at[:4, :N].set(state.astype(jnp.float32))

    x_pad = jnp.zeros((T, N_PAD), jnp.float32).at[:, :N].set(x_seq.astype(jnp.float32))

    # TODO(synk): lane-pack several independent networks (block-diagonal W_eff,
    # 10x12=120 lanes) and, on v7x, add a leading "parallel" batch grid axis so
    # both TensorCores are busy; a single network uses only 12/128 lanes of one TC.
    spiked, s_out = pl.pallas_call(
        _lif_kernel,
        out_shape=(
            jax.ShapeDtypeStruct((T, N_PAD), jnp.float32),
            jax.ShapeDtypeStruct((S_ROWS, N_PAD), jnp.float32),
        ),
        grid=(T // t_blk,),
        in_specs=[
            pl.BlockSpec((t_blk, N_PAD), lambda t: (t, 0)),    # x block of t_blk steps
            pl.BlockSpec((N_PAD, N_PAD), lambda t: (0, 0)),    # W_eff (resident)
            pl.BlockSpec((P_ROWS, N_PAD), lambda t: (0, 0)),   # derived params (resident)
            pl.BlockSpec((S_ROWS, N_PAD), lambda t: (0, 0)),   # initial state (resident)
        ],
        out_specs=(
            pl.BlockSpec((t_blk, N_PAD), lambda t: (t, 0)),    # spiked (full-lane tiles)
            pl.BlockSpec((S_ROWS, N_PAD), lambda t: (0, 0)),   # final state slab (resident)
        ),
        compiler_params=pltpu.CompilerParams(
            dimension_semantics=("arbitrary",)),               # sequential state dependence
    )(x_pad, w_pad, p_blk, s0)

    return spiked[:, :N], s_out[:4, :N]


# ---------------------------------------------------------------------------
# Pure-JAX reference of the torch forward (same padded layout & math).
def _reference(x_pad, w_pad, p_blk, s0):
    E_L, a, b, f_v, f_I, d_th, omb, d_V, itg = [p_blk[i:i + 1, :] for i in range(9)]

    def step(carry, x_row):
        v, g, theta, I_add = carry
        x = x_row[None, :]
        pre = (I_add + g) * 0.5
        I_tot = jnp.dot(pre, w_pad, preferred_element_type=jnp.float32) + 1.75 * x
        dv = a * (E_L - v) + I_tot * b
        v_next = v + dv
        spiked_soft = jnp.maximum(v_next - theta, 0.0)
        spiked = (v_next >= theta).astype(jnp.float32)
        not_spiked = 1.0 - spiked
        v_reset = E_L + f_v * (v - E_L) - d_V
        v_new = spiked * v_reset + not_spiked * v_next
        theta_new = omb * theta + spiked * d_th
        I_add_new = I_add - f_I * I_add + spiked * f_I
        g_new = spiked + not_spiked * (g - g * itg)
        return (v_new, g_new, theta_new, I_add_new), spiked_soft[0]

    init = (s0[0:1], s0[1:2], s0[2:3], s0[3:4])
    (v, g, th, ia), spk = jax.lax.scan(step, init, x_pad)
    state = jnp.concatenate([v, g, th, ia], axis=0)
    return spk[:, :N], state[:, :N]


if __name__ == "__main__":
    key = jax.random.PRNGKey(0)
    k_w, k_x = jax.random.split(key)

    T = 64  # simulated timesteps (fused into one kernel call, grid=(1,))

    # Deterministic parameter init (midpoints of parameter_init_intervals).
    E_L    = jnp.full((N,), -56.5, jnp.float32)
    tau_m  = jnp.full((N,), 4.25, jnp.float32)
    G      = jnp.full((N,), 0.75, jnp.float32)
    f_v    = jnp.full((N,), 0.3, jnp.float32)
    f_I    = jnp.full((N,), 0.35, jnp.float32)
    d_th_s = jnp.full((N,), 15.0, jnp.float32)
    b_s    = jnp.full((N,), 0.3, jnp.float32)
    d_V    = jnp.full((N,), 11.0, jnp.float32)
    tau_g  = jnp.full((N,), 5.2, jnp.float32)
    norm_R = (d_th_s - E_L) * 1.1

    params = jnp.stack([E_L, tau_m, G, f_v, f_I, d_th_s, b_s, d_V, tau_g, norm_R])

    # Weights: w_mean - w_var + 2*w_var*U[0,1)  (analogue of the torch init).
    w_mean, w_var = 0.2, 0.15
    w = (w_mean - w_var + 2.0 * w_var *
         jax.random.uniform(k_w, (N, N), jnp.float32))

    # neuron_types: first half excitatory (+1), second half inhibitory (-1);
    # matrix row i carries the sign of presynaptic neuron i.
    nt_vec = jnp.concatenate([jnp.ones((N // 2,)), -jnp.ones((N - N // 2,))]).astype(jnp.float32)
    nt_mat = jnp.broadcast_to(nt_vec[:, None], (N, N))

    mask = jnp.ones((N, N), jnp.float32) - jnp.eye(N, dtype=jnp.float32)

    # Initial hidden state: v = E_L, g = 0, theta_s = delta_theta_s, I_additive = 0.
    state = jnp.stack([E_L, jnp.zeros((N,)), d_th_s, jnp.zeros((N,))]).astype(jnp.float32)

    # Input current sequence.
    x_seq = jax.random.uniform(k_x, (T, N), jnp.float32) * 10.0

    spiked, new_state = lif_forward_sequence(x_seq, w, nt_mat, mask, params, state)
    spiked = jax.block_until_ready(spiked)
    new_state = jax.block_until_ready(new_state)

    # Reference trajectory (same padded math, pure JAX) for correctness check.
    derived = jnp.stack([E_L, G / tau_m, norm_R / tau_m, f_v, f_I, d_th_s,
                         1.0 - b_s, d_V, 1.0 / tau_g])
    p_blk = jnp.zeros((P_ROWS, N_PAD), jnp.float32)
    p_blk = p_blk.at[_P_OMB, :].set(1.0)
    p_blk = p_blk.at[:9, :N].set(derived)
    w_pad = jnp.zeros((N_PAD, N_PAD), jnp.float32).at[:N, :N].set(mask * w * nt_mat)
    s0 = jnp.zeros((S_ROWS, N_PAD), jnp.float32)
    s0 = s0.at[_S_TH, :].set(1e30)
    s0 = s0.at[:4, :N].set(state)
    x_pad = jnp.zeros((T, N_PAD), jnp.float32).at[:, :N].set(x_seq)
    ref_spiked, ref_state = _reference(x_pad, w_pad, p_blk, s0)

    assert jnp.allclose(spiked, ref_spiked, atol=1e-3, rtol=1e-4), (
        float(jnp.max(jnp.abs(spiked - ref_spiked))))
    assert jnp.allclose(new_state, ref_state, atol=1e-3, rtol=1e-4), (
        float(jnp.max(jnp.abs(new_state - ref_state))))

    print("KERNEL_OK")
</pallas_src>

<mosaic_0001>
module attributes {stable_mosaic.version = 11 : i64} {
  func.func @_lif_kernel(%arg0: i32, %arg1: memref<64x128xf32, #tpu.memory_space<vmem>>, %arg2: memref<128x128xf32, #tpu.memory_space<vmem>>, %arg3: memref<16x128xf32, #tpu.memory_space<vmem>>, %arg4: memref<8x128xf32, #tpu.memory_space<vmem>>, %arg5: memref<64x128xf32, #tpu.memory_space<vmem>>, %arg6: memref<8x128xf32, #tpu.memory_space<vmem>>) attributes {dimension_semantics = [#tpu.dimension_semantics<arbitrary>], iteration_bounds = array<i64: 1>, scalar_prefetch = 0 : i64, scratch_operands = 0 : i64, tpu.core_type = #tpu.core_type<tc>, window_params = [{transform_indices = @transform_0, window_bounds = array<i64: 64, 128>}, {pipeline_mode = #tpu.pipeline_mode<synchronous>, transform_indices = @transform_1, window_bounds = array<i64: 128, 128>}, {pipeline_mode = #tpu.pipeline_mode<synchronous>, transform_indices = @transform_2, window_bounds = array<i64: 16, 128>}, {pipeline_mode = #tpu.pipeline_mode<synchronous>, transform_indices = @transform_3, window_bounds = array<i64: 8, 128>}, {transform_indices = @transform_4, window_bounds = array<i64: 64, 128>}, {pipeline_mode = #tpu.pipeline_mode<synchronous>, transform_indices = @transform_5, window_bounds = array<i64: 8, 128>}]} {
    %c0_i32 = arith.constant 0 : i32
    %0 = arith.cmpi eq, %arg0, %c0_i32 : i32
    %1 = arith.extui %0 : i1 to i32
    %c0_i32_0 = arith.constant 0 : i32
    %2 = arith.cmpi ne, %1, %c0_i32_0 : i32
    scf.if %2 {
      %c0_24 = arith.constant 0 : index
      %c0_25 = arith.constant 0 : index
      %22 = vector.load %arg4[%c0_24, %c0_25] : memref<8x128xf32, #tpu.memory_space<vmem>>, vector<8x128xf32>
      %c0_26 = arith.constant 0 : index
      %c0_27 = arith.constant 0 : index
      %23 = vector.load %arg6[%c0_26, %c0_27] : memref<8x128xf32, #tpu.memory_space<vmem>>, vector<8x128xf32>
      tpu.vector_store %arg6[%c0_26, %c0_27], %22 {strides = array<i32>} : memref<8x128xf32, #tpu.memory_space<vmem>>, vector<8x128xf32>,
    } else {
    }
    %c0 = arith.constant 0 : index
    %c0_1 = arith.constant 0 : index
    %3 = vector.load %arg3[%c0, %c0_1] : memref<16x128xf32, #tpu.memory_space<vmem>>, vector<1x128xf32>
    %c1 = arith.constant 1 : index
    %c0_2 = arith.constant 0 : index
    %4 = vector.load %arg3[%c1, %c0_2] : memref<16x128xf32, #tpu.memory_space<vmem>>, vector<1x128xf32>
    %c2 = arith.constant 2 : index
    %c0_3 = arith.constant 0 : index
    %5 = vector.load %arg3[%c2, %c0_3] : memref<16x128xf32, #tpu.memory_space<vmem>>, vector<1x128xf32>
    %c3 = arith.constant 3 : index
    %c0_4 = arith.constant 0 : index
    %6 = vector.load %arg3[%c3, %c0_4] : memref<16x128xf32, #tpu.memory_space<vmem>>, vector<1x128xf32>
    %c4 = arith.constant 4 : index
    %c0_5 = arith.constant 0 : index
    %7 = vector.load %arg3[%c4, %c0_5] : memref<16x128xf32, #tpu.memory_space<vmem>>, vector<1x128xf32>
    %c5 = arith.constant 5 : index
    %c0_6 = arith.constant 0 : index
    %8 = vector.load %arg3[%c5, %c0_6] : memref<16x128xf32, #tpu.memory_space<vmem>>, vector<1x128xf32>
    %c6 = arith.constant 6 : index
    %c0_7 = arith.constant 0 : index
    %9 = vector.load %arg3[%c6, %c0_7] : memref<16x128xf32, #tpu.memory_space<vmem>>, vector<1x128xf32>
    %c7 = arith.constant 7 : index
    %c0_8 = arith.constant 0 : index
    %10 = vector.load %arg3[%c7, %c0_8] : memref<16x128xf32, #tpu.memory_space<vmem>>, vector<1x128xf32>
    %c8 = arith.constant 8 : index
    %c0_9 = arith.constant 0 : index
    %11 = vector.load %arg3[%c8, %c0_9] : memref<16x128xf32, #tpu.memory_space<vmem>>, vector<1x128xf32>
    %c0_10 = arith.constant 0 : index
    %c0_11 = arith.constant 0 : index
    %12 = vector.load %arg2[%c0_10, %c0_11] : memref<128x128xf32, #tpu.memory_space<vmem>>, vector<128x128xf32>
    %c0_12 = arith.constant 0 : index
    %c0_13 = arith.constant 0 : index
    %13 = vector.load %arg6[%c0_12, %c0_13] : memref<8x128xf32, #tpu.memory_space<vmem>>, vector<1x128xf32>
    %c1_14 = arith.constant 1 : index
    %c0_15 = arith.constant 0 : index
    %14 = vector.load %arg6[%c1_14, %c0_15] : memref<8x128xf32, #tpu.memory_space<vmem>>, vector<1x128xf32>
    %c2_16 = arith.constant 2 : index
    %c0_17 = arith.constant 0 : index
    %15 = vector.load %arg6[%c2_16, %c0_17] : memref<8x128xf32, #tpu.memory_space<vmem>>, vector<1x128xf32>
    %c3_18 = arith.constant 3 : index
    %c0_19 = arith.constant 0 : index
    %16 = vector.load %arg6[%c3_18, %c0_19] : memref<8x128xf32, #tpu.memory_space<vmem>>, vector<1x128xf32>
    %c0_i32_20 = arith.constant 0 : i32
    %c8_i32 = arith.constant 8 : i32
    %17 = arith.addi %c0_i32_20, %c8_i32 : i32
    %c1_i32 = arith.constant 1 : i32
    %18:4 = scf.for %arg7 = %c0_i32_20 to %17 step %c1_i32 iter_args(%arg8 = %13, %arg9 = %14, %arg10 = %15, %arg11 = %16) -> (vector<1x128xf32>, vector<1x128xf32>, vector<1x128xf32>, vector<1x128xf32>)  : i32 {
      %c8_i32_24 = arith.constant 8 : i32
      %22 = arith.muli %arg7, %c8_i32_24 : i32
      %23 = tpu.assume_multiple %22, 8 : i32
      %24 = arith.index_cast %23 : i32 to index
      %c0_25 = arith.constant 0 : index
      %25 = vector.load %arg1[%24, %c0_25] : memref<64x128xf32, #tpu.memory_space<vmem>>, vector<8x128xf32>
      %26 = vector.extract_strided_slice %25 {offsets = [0, 0], sizes = [1, 128], strides = [1, 1]} : vector<8x128xf32> to vector<1x128xf32>
      %27 = arith.addf %arg11, %arg9 : vector<1x128xf32>
      %cst_26 = arith.constant 5.000000e-01 : f32
      %28 = vector.broadcast %cst_26 : f32 to vector<1x128xf32>
      %29 = arith.mulf %27, %28 : vector<1x128xf32>
      %cst_27 = arith.constant dense<0.000000e+00> : vector<1x128xf32>
      %30 = tpu.matmul %29, %12, %cst_27 {dimension_numbers = #tpu.dot_dimension_numbers<[1], [0], [0], [1], [0, 0, 1, 1], [], []>} : vector<1x128xf32>, vector<128x128xf32>, vector<1x128xf32> -> vector<1x128xf32>
      %cst_28 = arith.constant 1.750000e+00 : f32
      %31 = vector.broadcast %cst_28 : f32 to vector<1x128xf32>
      %32 = arith.mulf %31, %26 : vector<1x128xf32>
      %33 = arith.addf %30, %32 : vector<1x128xf32>
      %34 = arith.subf %3, %arg8 : vector<1x128xf32>
      %35 = arith.mulf %4, %34 : vector<1x128xf32>
      %36 = arith.mulf %33, %5 : vector<1x128xf32>
      %37 = arith.addf %35, %36 : vector<1x128xf32>
      %38 = arith.addf %arg8, %37 : vector<1x128xf32>
      %39 = arith.subf %38, %arg10 : vector<1x128xf32>
      %cst_29 = arith.constant 0.000000e+00 : f32
      %40 = vector.broadcast %cst_29 : f32 to vector<1x128xf32>
      %41 = arith.maximumf %39, %40 : vector<1x128xf32>
      %42 = arith.cmpf oge, %38, %arg10 : vector<1x128xf32>
      %43 = arith.extui %42 : vector<1x128xi1> to vector<1x128xi32>
      %44 = arith.sitofp %43 : vector<1x128xi32> to vector<1x128xf32>
      %cst_30 = arith.constant 1.000000e+00 : f32
      %45 = vector.broadcast %cst_30 : f32 to vector<1x128xf32>
      %46 = arith.subf %45, %44 : vector<1x128xf32>
      %47 = arith.subf %arg8, %3 : vector<1x128xf32>
      %48 = arith.mulf %6, %47 : vector<1x128xf32>
      %49 = arith.addf %3, %48 : vector<1x128xf32>
      %50 = arith.subf %49, %10 : vector<1x128xf32>
      %51 = arith.mulf %44, %50 : vector<1x128xf32>
      %52 = arith.mulf %46, %38 : vector<1x128xf32>
      %53 = arith.addf %51, %52 : vector<1x128xf32>
      %54 = arith.mulf %9, %arg10 : vector<1x128xf32>
      %55 = arith.mulf %44, %8 : vector<1x128xf32>
      %56 = arith.addf %54, %55 : vector<1x128xf32>
      %57 = arith.mulf %7, %arg11 : vector<1x128xf32>
      %58 = arith.subf %arg11, %57 : vector<1x128xf32>
      %59 = arith.mulf %44, %7 : vector<1x128xf32>
      %60 = arith.addf %58, %59 : vector<1x128xf32>
      %61 = arith.mulf %arg9, %11 : vector<1x128xf32>
      %62 = arith.subf %arg9, %61 : vector<1x128xf32>
      %63 = arith.mulf %46, %62 : vector<1x128xf32>
      %64 = arith.addf %44, %63 : vector<1x128xf32>
      %65 = vector.extract_strided_slice %25 {offsets = [1, 0], sizes = [1, 128], strides = [1, 1]} : vector<8x128xf32> to vector<1x128xf32>
      %66 = arith.addf %60, %64 : vector<1x128xf32>
      %cst_31 = arith.constant 5.000000e-01 : f32
      %67 = vector.broadcast %cst_31 : f32 to vector<1x128xf32>
      %68 = arith.mulf %66, %67 : vector<1x128xf32>
      %cst_32 = arith.constant dense<0.000000e+00> : vector<1x128xf32>
      %69 = tpu.matmul %68, %12, %cst_32 {dimension_numbers = #tpu.dot_dimension_numbers<[1], [0], [0], [1], [0, 0, 1, 1], [], []>} : vector<1x128xf32>, vector<128x128xf32>, vector<1x128xf32> -> vector<1x128xf32>
      %cst_33 = arith.constant 1.750000e+00 : f32
      %70 = vector.broadcast %cst_33 : f32 to vector<1x128xf32>
      %71 = arith.mulf %70, %65 : vector<1x128xf32>
      %72 = arith.addf %69, %71 : vector<1x128xf32>
      %73 = arith.subf %3, %53 : vector<1x128xf32>
      %74 = arith.mulf %4, %73 : vector<1x128xf32>
      %75 = arith.mulf %72, %5 : vector<1x128xf32>
      %76 = arith.addf %74, %75 : vector<1x128xf32>
      %77 = arith.addf %53, %76 : vector<1x128xf32>
      %78 = arith.subf %77, %56 : vector<1x128xf32>
      %cst_34 = arith.constant 0.000000e+00 : f32
      %79 = vector.broadcast %cst_34 : f32 to vector<1x128xf32>
      %80 = arith.maximumf %78, %79 : vector<1x128xf32>
      %81 = arith.cmpf oge, %77, %56 : vector<1x128xf32>
      %82 = arith.extui %81 : vector<1x128xi1> to vector<1x128xi32>
      %83 = arith.sitofp %82 : vector<1x128xi32> to vector<1x128xf32>
      %cst_35 = arith.constant 1.000000e+00 : f32
      %84 = vector.broadcast %cst_35 : f32 to vector<1x128xf32>
      %85 = arith.subf %84, %83 : vector<1x128xf32>
      %86 = arith.subf %53, %3 : vector<1x128xf32>
      %87 = arith.mulf %6, %86 : vector<1x128xf32>
      %88 = arith.addf %3, %87 : vector<1x128xf32>
      %89 = arith.subf %88, %10 : vector<1x128xf32>
      %90 = arith.mulf %83, %89 : vector<1x128xf32>
      %91 = arith.mulf %85, %77 : vector<1x128xf32>
      %92 = arith.addf %90, %91 : vector<1x128xf32>
      %93 = arith.mulf %9, %56 : vector<1x128xf32>
      %94 = arith.mulf %83, %8 : vector<1x128xf32>
      %95 = arith.addf %93, %94 : vector<1x128xf32>
      %96 = arith.mulf %7, %60 : vector<1x128xf32>
      %97 = arith.subf %60, %96 : vector<1x128xf32>
      %98 = arith.mulf %83, %7 : vector<1x128xf32>
      %99 = arith.addf %97, %98 : vector<1x128xf32>
      %100 = arith.mulf %64, %11 : vector<1x128xf32>
      %101 = arith.subf %64, %100 : vector<1x128xf32>
      %102 = arith.mulf %85, %101 : vector<1x128xf32>
      %103 = arith.addf %83, %102 : vector<1x128xf32>
      %104 = vector.extract_strided_slice %25 {offsets = [2, 0], sizes = [1, 128], strides = [1, 1]} : vector<8x128xf32> to vector<1x128xf32>
      %105 = arith.addf %99, %103 : vector<1x128xf32>
      %cst_36 = arith.constant 5.000000e-01 : f32
      %106 = vector.broadcast %cst_36 : f32 to vector<1x128xf32>
      %107 = arith.mulf %105, %106 : vector<1x128xf32>
      %cst_37 = arith.constant dense<0.000000e+00> : vector<1x128xf32>
      %108 = tpu.matmul %107, %12, %cst_37 {dimension_numbers = #tpu.dot_dimension_numbers<[1], [0], [0], [1], [0, 0, 1, 1], [], []>} : vector<1x128xf32>, vector<128x128xf32>, vector<1x128xf32> -> vector<1x128xf32>
      %cst_38 = arith.constant 1.750000e+00 : f32
      %109 = vector.broadcast %cst_38 : f32 to vector<1x128xf32>
      %110 = arith.mulf %109, %104 : vector<1x128xf32>
      %111 = arith.addf %108, %110 : vector<1x128xf32>
      %112 = arith.subf %3, %92 : vector<1x128xf32>
      %113 = arith.mulf %4, %112 : vector<1x128xf32>
      %114 = arith.mulf %111, %5 : vector<1x128xf32>
      %115 = arith.addf %113, %114 : vector<1x128xf32>
      %116 = arith.addf %92, %115 : vector<1x128xf32>
      %117 = arith.subf %116, %95 : vector<1x128xf32>
      %cst_39 = arith.constant 0.000000e+00 : f32
      %118 = vector.broadcast %cst_39 : f32 to vector<1x128xf32>
      %119 = arith.maximumf %117, %118 : vector<1x128xf32>
      %120 = arith.cmpf oge, %116, %95 : vector<1x128xf32>
      %121 = arith.extui %120 : vector<1x128xi1> to vector<1x128xi32>
      %122 = arith.sitofp %121 : vector<1x128xi32> to vector<1x128xf32>
      %cst_40 = arith.constant 1.000000e+00 : f32
      %123 = vector.broadcast %cst_40 : f32 to vector<1x128xf32>
      %124 = arith.subf %123, %122 : vector<1x128xf32>
      %125 = arith.subf %92, %3 : vector<1x128xf32>
      %126 = arith.mulf %6, %125 : vector<1x128xf32>
      %127 = arith.addf %3, %126 : vector<1x128xf32>
      %128 = arith.subf %127, %10 : vector<1x128xf32>
      %129 = arith.mulf %122, %128 : vector<1x128xf32>
      %130 = arith.mulf %124, %116 : vector<1x128xf32>
      %131 = arith.addf %129, %130 : vector<1x128xf32>
      %132 = arith.mulf %9, %95 : vector<1x128xf32>
      %133 = arith.mulf %122, %8 : vector<1x128xf32>
      %134 = arith.addf %132, %133 : vector<1x128xf32>
      %135 = arith.mulf %7, %99 : vector<1x128xf32>
      %136 = arith.subf %99, %135 : vector<1x128xf32>
      %137 = arith.mulf %122, %7 : vector<1x128xf32>
      %138 = arith.addf %136, %137 : vector<1x128xf32>
      %139 = arith.mulf %103, %11 : vector<1x128xf32>
      %140 = arith.subf %103, %139 : vector<1x128xf32>
      %141 = arith.mulf %124, %140 : vector<1x128xf32>
      %142 = arith.addf %122, %141 : vector<1x128xf32>
      %143 = vector.extract_strided_slice %25 {offsets = [3, 0], sizes = [1, 128], strides = [1, 1]} : vector<8x128xf32> to vector<1x128xf32>
      %144 = arith.addf %138, %142 : vector<1x128xf32>
      %cst_41 = arith.constant 5.000000e-01 : f32
      %145 = vector.broadcast %cst_41 : f32 to vector<1x128xf32>
      %146 = arith.mulf %144, %145 : vector<1x128xf32>
      %cst_42 = arith.constant dense<0.000000e+00> : vector<1x128xf32>
      %147 = tpu.matmul %146, %12, %cst_42 {dimension_numbers = #tpu.dot_dimension_numbers<[1], [0], [0], [1], [0, 0, 1, 1], [], []>} : vector<1x128xf32>, vector<128x128xf32>, vector<1x128xf32> -> vector<1x128xf32>
      %cst_43 = arith.constant 1.750000e+00 : f32
      %148 = vector.broadcast %cst_43 : f32 to vector<1x128xf32>
      %149 = arith.mulf %148, %143 : vector<1x128xf32>
      %150 = arith.addf %147, %149 : vector<1x128xf32>
      %151 = arith.subf %3, %131 : vector<1x128xf32>
      %152 = arith.mulf %4, %151 : vector<1x128xf32>
      %153 = arith.mulf %150, %5 : vector<1x128xf32>
      %154 = arith.addf %152, %153 : vector<1x128xf32>
      %155 = arith.addf %131, %154 : vector<1x128xf32>
      %156 = arith.subf %155, %134 : vector<1x128xf32>
      %cst_44 = arith.constant 0.000000e+00 : f32
      %157 = vector.broadcast %cst_44 : f32 to vector<1x128xf32>
      %158 = arith.maximumf %156, %157 : vector<1x128xf32>
      %159 = arith.cmpf oge, %155, %134 : vector<1x128xf32>
      %160 = arith.extui %159 : vector<1x128xi1> to vector<1x128xi32>
      %161 = arith.sitofp %160 : vector<1x128xi32> to vector<1x128xf32>
      %cst_45 = arith.constant 1.000000e+00 : f32
      %162 = vector.broadcast %cst_45 : f32 to vector<1x128xf32>
      %163 = arith.subf %162, %161 : vector<1x128xf32>
      %164 = arith.subf %131, %3 : vector<1x128xf32>
      %165 = arith.mulf %6, %164 : vector<1x128xf32>
      %166 = arith.addf %3, %165 : vector<1x128xf32>
      %167 = arith.subf %166, %10 : vector<1x128xf32>
      %168 = arith.mulf %161, %167 : vector<1x128xf32>
      %169 = arith.mulf %163, %155 : vector<1x128xf32>
      %170 = arith.addf %168, %169 : vector<1x128xf32>
      %171 = arith.mulf %9, %134 : vector<1x128xf32>
      %172 = arith.mulf %161, %8 : vector<1x128xf32>
      %173 = arith.addf %171, %172 : vector<1x128xf32>
      %174 = arith.mulf %7, %138 : vector<1x128xf32>
      %175 = arith.subf %138, %174 : vector<1x128xf32>
      %176 = arith.mulf %161, %7 : vector<1x128xf32>
      %177 = arith.addf %175, %176 : vector<1x128xf32>
      %178 = arith.mulf %142, %11 : vector<1x128xf32>
      %179 = arith.subf %142, %178 : vector<1x128xf32>
      %180 = arith.mulf %163, %179 : vector<1x128xf32>
      %181 = arith.addf %161, %180 : vector<1x128xf32>
      %182 = vector.extract_strided_slice %25 {offsets = [4, 0], sizes = [1, 128], strides = [1, 1]} : vector<8x128xf32> to vector<1x128xf32>
      %183 = arith.addf %177, %181 : vector<1x128xf32>
      %cst_46 = arith.constant 5.000000e-01 : f32
      %184 = vector.broadcast %cst_46 : f32 to vector<1x128xf32>
      %185 = arith.mulf %183, %184 : vector<1x128xf32>
      %cst_47 = arith.constant dense<0.000000e+00> : vector<1x128xf32>
      %186 = tpu.matmul %185, %12, %cst_47 {dimension_numbers = #tpu.dot_dimension_numbers<[1], [0], [0], [1], [0, 0, 1, 1], [], []>} : vector<1x128xf32>, vector<128x128xf32>, vector<1x128xf32> -> vector<1x128xf32>
      %cst_48 = arith.constant 1.750000e+00 : f32
      %187 = vector.broadcast %cst_48 : f32 to vector<1x128xf32>
      %188 = arith.mulf %187, %182 : vector<1x128xf32>
      %189 = arith.addf %186, %188 : vector<1x128xf32>
      %190 = arith.subf %3, %170 : vector<1x128xf32>
      %191 = arith.mulf %4, %190 : vector<1x128xf32>
      %192 = arith.mulf %189, %5 : vector<1x128xf32>
      %193 = arith.addf %191, %192 : vector<1x128xf32>
      %194 = arith.addf %170, %193 : vector<1x128xf32>
      %195 = arith.subf %194, %173 : vector<1x128xf32>
      %cst_49 = arith.constant 0.000000e+00 : f32
      %196 = vector.broadcast %cst_49 : f32 to vector<1x128xf32>
      %197 = arith.maximumf %195, %196 : vector<1x128xf32>
      %198 = arith.cmpf oge, %194, %173 : vector<1x128xf32>
      %199 = arith.extui %198 : vector<1x128xi1> to vector<1x128xi32>
      %200 = arith.sitofp %199 : vector<1x128xi32> to vector<1x128xf32>
      %cst_50 = arith.constant 1.000000e+00 : f32
      %201 = vector.broadcast %cst_50 : f32 to vector<1x128xf32>
      %202 = arith.subf %201, %200 : vector<1x128xf32>
      %203 = arith.subf %170, %3 : vector<1x128xf32>
      %204 = arith.mulf %6, %203 : vector<1x128xf32>
      %205 = arith.addf %3, %204 : vector<1x128xf32>
      %206 = arith.subf %205, %10 : vector<1x128xf32>
      %207 = arith.mulf %200, %206 : vector<1x128xf32>
      %208 = arith.mulf %202, %194 : vector<1x128xf32>
      %209 = arith.addf %207, %208 : vector<1x128xf32>
      %210 = arith.mulf %9, %173 : vector<1x128xf32>
      %211 = arith.mulf %200, %8 : vector<1x128xf32>
      %212 = arith.addf %210, %211 : vector<1x128xf32>
      %213 = arith.mulf %7, %177 : vector<1x128xf32>
      %214 = arith.subf %177, %213 : vector<1x128xf32>
      %215 = arith.mulf %200, %7 : vector<1x128xf32>
      %216 = arith.addf %214, %215 : vector<1x128xf32>
      %217 = arith.mulf %181, %11 : vector<1x128xf32>
      %218 = arith.subf %181, %217 : vector<1x128xf32>
      %219 = arith.mulf %202, %218 : vector<1x128xf32>
      %220 = arith.addf %200, %219 : vector<1x128xf32>
      %221 = vector.extract_strided_slice %25 {offsets = [5, 0], sizes = [1, 128], strides = [1, 1]} : vector<8x128xf32> to vector<1x128xf32>
      %222 = arith.addf %216, %220 : vector<1x128xf32>
      %cst_51 = arith.constant 5.000000e-01 : f32
      %223 = vector.broadcast %cst_51 : f32 to vector<1x128xf32>
      %224 = arith.mulf %222, %223 : vector<1x128xf32>
      %cst_52 = arith.constant dense<0.000000e+00> : vector<1x128xf32>
      %225 = tpu.matmul %224, %12, %cst_52 {dimension_numbers = #tpu.dot_dimension_numbers<[1], [0], [0], [1], [0, 0, 1, 1], [], []>} : vector<1x128xf32>, vector<128x128xf32>, vector<1x128xf32> -> vector<1x128xf32>
      %cst_53 = arith.constant 1.750000e+00 : f32
      %226 = vector.broadcast %cst_53 : f32 to vector<1x128xf32>
      %227 = arith.mulf %226, %221 : vector<1x128xf32>
      %228 = arith.addf %225, %227 : vector<1x128xf32>
      %229 = arith.subf %3, %209 : vector<1x128xf32>
      %230 = arith.mulf %4, %229 : vector<1x128xf32>
      %231 = arith.mulf %228, %5 : vector<1x128xf32>
      %232 = arith.addf %230, %231 : vector<1x128xf32>
      %233 = arith.addf %209, %232 : vector<1x128xf32>
      %234 = arith.subf %233, %212 : vector<1x128xf32>
      %cst_54 = arith.constant 0.000000e+00 : f32
      %235 = vector.broadcast %cst_54 : f32 to vector<1x128xf32>
      %236 = arith.maximumf %234, %235 : vector<1x128xf32>
      %237 = arith.cmpf oge, %233, %212 : vector<1x128xf32>
      %238 = arith.extui %237 : vector<1x128xi1> to vector<1x128xi32>
      %239 = arith.sitofp %238 : vector<1x128xi32> to vector<1x128xf32>
      %cst_55 = arith.constant 1.000000e+00 : f32
      %240 = vector.broadcast %cst_55 : f32 to vector<1x128xf32>
      %241 = arith.subf %240, %239 : vector<1x128xf32>
      %242 = arith.subf %209, %3 : vector<1x128xf32>
      %243 = arith.mulf %6, %242 : vector<1x128xf32>
      %244 = arith.addf %3, %243 : vector<1x128xf32>
      %245 = arith.subf %244, %10 : vector<1x128xf32>
      %246 = arith.mulf %239, %245 : vector<1x128xf32>
      %247 = arith.mulf %241, %233 : vector<1x128xf32>
      %248 = arith.addf %246, %247 : vector<1x128xf32>
      %249 = arith.mulf %9, %212 : vector<1x128xf32>
      %250 = arith.mulf %239, %8 : vector<1x128xf32>
      %251 = arith.addf %249, %250 : vector<1x128xf32>
      %252 = arith.mulf %7, %216 : vector<1x128xf32>
      %253 = arith.subf %216, %252 : vector<1x128xf32>
      %254 = arith.mulf %239, %7 : vector<1x128xf32>
      %255 = arith.addf %253, %254 : vector<1x128xf32>
      %256 = arith.mulf %220, %11 : vector<1x128xf32>
      %257 = arith.subf %220, %256 : vector<1x128xf32>
      %258 = arith.mulf %241, %257 : vector<1x128xf32>
      %259 = arith.addf %239, %258 : vector<1x128xf32>
      %260 = vector.extract_strided_slice %25 {offsets = [6, 0], sizes = [1, 128], strides = [1, 1]} : vector<8x128xf32> to vector<1x128xf32>
      %261 = arith.addf %255, %259 : vector<1x128xf32>
      %cst_56 = arith.constant 5.000000e-01 : f32
      %262 = vector.broadcast %cst_56 : f32 to vector<1x128xf32>
      %263 = arith.mulf %261, %262 : vector<1x128xf32>
      %cst_57 = arith.constant dense<0.000000e+00> : vector<1x128xf32>
      %264 = tpu.matmul %263, %12, %cst_57 {dimension_numbers = #tpu.dot_dimension_numbers<[1], [0], [0], [1], [0, 0, 1, 1], [], []>} : vector<1x128xf32>, vector<128x128xf32>, vector<1x128xf32> -> vector<1x128xf32>
      %cst_58 = arith.constant 1.750000e+00 : f32
      %265 = vector.broadcast %cst_58 : f32 to vector<1x128xf32>
      %266 = arith.mulf %265, %260 : vector<1x128xf32>
      %267 = arith.addf %264, %266 : vector<1x128xf32>
      %268 = arith.subf %3, %248 : vector<1x128xf32>
      %269 = arith.mulf %4, %268 : vector<1x128xf32>
      %270 = arith.mulf %267, %5 : vector<1x128xf32>
      %271 = arith.addf %269, %270 : vector<1x128xf32>
      %272 = arith.addf %248, %271 : vector<1x128xf32>
      %273 = arith.subf %272, %251 : vector<1x128xf32>
      %cst_59 = arith.constant 0.000000e+00 : f32
      %274 = vector.broadcast %cst_59 : f32 to vector<1x128xf32>
      %275 = arith.maximumf %273, %274 : vector<1x128xf32>
      %276 = arith.cmpf oge, %272, %251 : vector<1x128xf32>
      %277 = arith.extui %276 : vector<1x128xi1> to vector<1x128xi32>
      %278 = arith.sitofp %277 : vector<1x128xi32> to vector<1x128xf32>
      %cst_60 = arith.constant 1.000000e+00 : f32
      %279 = vector.broadcast %cst_60 : f32 to vector<1x128xf32>
      %280 = arith.subf %279, %278 : vector<1x128xf32>
      %281 = arith.subf %248, %3 : vector<1x128xf32>
      %282 = arith.mulf %6, %281 : vector<1x128xf32>
      %283 = arith.addf %3, %282 : vector<1x128xf32>
      %284 = arith.subf %283, %10 : vector<1x128xf32>
      %285 = arith.mulf %278, %284 : vector<1x128xf32>
      %286 = arith.mulf %280, %272 : vector<1x128xf32>
      %287 = arith.addf %285, %286 : vector<1x128xf32>
      %288 = arith.mulf %9, %251 : vector<1x128xf32>
      %289 = arith.mulf %278, %8 : vector<1x128xf32>
      %290 = arith.addf %288, %289 : vector<1x128xf32>
      %291 = arith.mulf %7, %255 : vector<1x128xf32>
      %292 = arith.subf %255, %291 : vector<1x128xf32>
      %293 = arith.mulf %278, %7 : vector<1x128xf32>
      %294 = arith.addf %292, %293 : vector<1x128xf32>
      %295 = arith.mulf %259, %11 : vector<1x128xf32>
      %296 = arith.subf %259, %295 : vector<1x128xf32>
      %297 = arith.mulf %280, %296 : vector<1x128xf32>
      %298 = arith.addf %278, %297 : vector<1x128xf32>
      %299 = vector.extract_strided_slice %25 {offsets = [7, 0], sizes = [1, 128], strides = [1, 1]} : vector<8x128xf32> to vector<1x128xf32>
      %300 = arith.addf %294, %298 : vector<1x128xf32>
      %cst_61 = arith.constant 5.000000e-01 : f32
      %301 = vector.broadcast %cst_61 : f32 to vector<1x128xf32>
      %302 = arith.mulf %300, %301 : vector<1x128xf32>
      %cst_62 = arith.constant dense<0.000000e+00> : vector<1x128xf32>
      %303 = tpu.matmul %302, %12, %cst_62 {dimension_numbers = #tpu.dot_dimension_numbers<[1], [0], [0], [1], [0, 0, 1, 1], [], []>} : vector<1x128xf32>, vector<128x128xf32>, vector<1x128xf32> -> vector<1x128xf32>
      %cst_63 = arith.constant 1.750000e+00 : f32
      %304 = vector.broadcast %cst_63 : f32 to vector<1x128xf32>
      %305 = arith.mulf %304, %299 : vector<1x128xf32>
      %306 = arith.addf %303, %305 : vector<1x128xf32>
      %307 = arith.subf %3, %287 : vector<1x128xf32>
      %308 = arith.mulf %4, %307 : vector<1x128xf32>
      %309 = arith.mulf %306, %5 : vector<1x128xf32>
      %310 = arith.addf %308, %309 : vector<1x128xf32>
      %311 = arith.addf %287, %310 : vector<1x128xf32>
      %312 = arith.subf %311, %290 : vector<1x128xf32>
      %cst_64 = arith.constant 0.000000e+00 : f32
      %313 = vector.broadcast %cst_64 : f32 to vector<1x128xf32>
      %314 = arith.maximumf %312, %313 : vector<1x128xf32>
      %315 = arith.cmpf oge, %311, %290 : vector<1x128xf32>
      %316 = arith.extui %315 : vector<1x128xi1> to vector<1x128xi32>
      %317 = arith.sitofp %316 : vector<1x128xi32> to vector<1x128xf32>
      %cst_65 = arith.constant 1.000000e+00 : f32
      %318 = vector.broadcast %cst_65 : f32 to vector<1x128xf32>
      %319 = arith.subf %318, %317 : vector<1x128xf32>
      %320 = arith.subf %287, %3 : vector<1x128xf32>
      %321 = arith.mulf %6, %320 : vector<1x128xf32>
      %322 = arith.addf %3, %321 : vector<1x128xf32>
      %323 = arith.subf %322, %10 : vector<1x128xf32>
      %324 = arith.mulf %317, %323 : vector<1x128xf32>
      %325 = arith.mulf %319, %311 : vector<1x128xf32>
      %326 = arith.addf %324, %325 : vector<1x128xf32>
      %327 = arith.mulf %9, %290 : vector<1x128xf32>
      %328 = arith.mulf %317, %8 : vector<1x128xf32>
      %329 = arith.addf %327, %328 : vector<1x128xf32>
      %330 = arith.mulf %7, %294 : vector<1x128xf32>
      %331 = arith.subf %294, %330 : vector<1x128xf32>
      %332 = arith.mulf %317, %7 : vector<1x128xf32>
      %333 = arith.addf %331, %332 : vector<1x128xf32>
      %334 = arith.mulf %298, %11 : vector<1x128xf32>
      %335 = arith.subf %298, %334 : vector<1x128xf32>
      %336 = arith.mulf %319, %335 : vector<1x128xf32>
      %337 = arith.addf %317, %336 : vector<1x128xf32>
      %338 = tpu.concatenate %41, %80, %119, %158, %197, %236, %275, %314 in 0 : vector<1x128xf32>, vector<1x128xf32>, vector<1x128xf32>, vector<1x128xf32>, vector<1x128xf32>, vector<1x128xf32>, vector<1x128xf32>, vector<1x128xf32> -> vector<8x128xf32>
      %339 = arith.index_cast %23 : i32 to index
      %c0_66 = arith.constant 0 : index
      %340 = vector.load %arg5[%339, %c0_66] : memref<64x128xf32, #tpu.memory_space<vmem>>, vector<8x128xf32>
      tpu.vector_store %arg5[%339, %c0_66], %338 {strides = array<i32>} : memref<64x128xf32, #tpu.memory_space<vmem>>, vector<8x128xf32>,
      scf.yield %326, %337, %329, %333 : vector<1x128xf32>, vector<1x128xf32>, vector<1x128xf32>, vector<1x128xf32>
    }
    %c8_i32_21 = arith.constant 8 : i32
    %cst = arith.constant 0.000000e+00 : f32
    %19 = vector.broadcast %cst : f32 to vector<4x128xf32>
    %20 = tpu.concatenate %18#0, %18#1, %18#2, %18#3, %19 in 0 : vector<1x128xf32>, vector<1x128xf32>, vector<1x128xf32>, vector<1x128xf32>, vector<4x128xf32> -> vector<8x128xf32>
    %c0_22 = arith.constant 0 : index
    %c0_23 = arith.constant 0 : index
    %21 = vector.load %arg6[%c0_22, %c0_23] : memref<8x128xf32, #tpu.memory_space<vmem>>, vector<8x128xf32>
    tpu.vector_store %arg6[%c0_22, %c0_23], %20 {strides = array<i32>} : memref<8x128xf32, #tpu.memory_space<vmem>>, vector<8x128xf32>,
    return
  }
  func.func @transform_0(%arg0: i32) -> (i32, i32) {
    %c0_i32 = arith.constant 0 : i32
    %c0_i32_0 = arith.constant 0 : i32
    return %arg0, %c0_i32 : i32, i32
  }
  func.func @transform_1(%arg0: i32) -> (i32, i32) {
    %c0_i32 = arith.constant 0 : i32
    %c0_i32_0 = arith.constant 0 : i32
    %c0_i32_1 = arith.constant 0 : i32
    return %c0_i32, %c0_i32_0 : i32, i32
  }
  func.func @transform_2(%arg0: i32) -> (i32, i32) {
    %c0_i32 = arith.constant 0 : i32
    %c0_i32_0 = arith.constant 0 : i32
    %c0_i32_1 = arith.constant 0 : i32
    return %c0_i32, %c0_i32_0 : i32, i32
  }
  func.func @transform_3(%arg0: i32) -> (i32, i32) {
    %c0_i32 = arith.constant 0 : i32
    %c0_i32_0 = arith.constant 0 : i32
    %c0_i32_1 = arith.constant 0 : i32
    return %c0_i32, %c0_i32_0 : i32, i32
  }
  func.func @transform_4(%arg0: i32) -> (i32, i32) {
    %c0_i32 = arith.constant 0 : i32
    %c0_i32_0 = arith.constant 0 : i32
    return %arg0, %c0_i32 : i32, i32
  }
  func.func @transform_5(%arg0: i32) -> (i32, i32) {
    %c0_i32 = arith.constant 0 : i32
    %c0_i32_0 = arith.constant 0 : i32
    %c0_i32_1 = arith.constant 0 : i32
    return %c0_i32, %c0_i32_0 : i32, i32
  }
}

</mosaic_0001>

<bundles_post_ra>
// kernel: tpu_custom_call.1
= control target key start
LH: loop header
LB: loop body
LE: loop exit
PB: predicated region body
PF: predicated region fallthrough
CT: control target
= control target key end

     0   :  { %11 = vsyncpa [#allocation3], 0  ;;  %s2390_s0 = inlined_call_operand.hbm [shape: f32[64,128], index: 0, kind: input, shape index: {}]   ;;  %s2391_s1 = inlined_call_operand.hbm [shape: f32[128,128], index: 1, kind: input, shape index: {}]   ;;  %s2392_s2 = inlined_call_operand.hbm [shape: f32[16,128], index: 2, kind: input, shape index: {}]   ;;  %s2393_s3 = inlined_call_operand.vmem [shape: f32[8,128], index: 3, kind: input, shape index: {}]   ;;  %s2394_s4 = inlined_call_operand.hbm [shape: f32[64,128], index: 4, kind: output, shape index: {0}]   ;;  %s2395_s5 = inlined_call_operand.hbm [shape: f32[8,128], index: 5, kind: output, shape index: {1}]  }
   0x1   :  { %12 = vsyncpa [#allocation6], 0 }
   0x2   :  { %13 = vsyncpa [#allocation4], 0 }
   0x3   :  { %14 = vsyncpa [#allocation10], 0  ;;  %s1867_s18 = smov [#allocation5]   ;;  %s1868_s20 = smov [#allocation2]  }
   0x4   :  { %s32_s19 = sshll.u32 %s1867_s18, 4  ;;  %s20_s21 = sshll.u32 %s1868_s20, 4  ;;  %s33_s19 = int_to_ptr.vmem [resolvable:$true] %s32_s19  ;;  %s1907_s21 = int_to_ptr.vmem [resolvable:$true] %s20_s21 }
   0x5   :  { %s1709_s24 = scalar_lea.hbm %s2391_s1, 2048 }
   0x6   :  { %p1710_p0 = scmp.ne.s32.totalorder %s2391_s1, %s1709_s24  ;;  %p1713_p1 = scmp.lt.u32.totalorder %s1709_s24, %s2391_s1 }
   0x8   :  { %p1715_p2 = pnand %p1713_p1, %p1710_p0 }
   0xa   :  { %1718 = shalt.err (!%p1715_p2)
}
   0xb   :  { %s1719_s29 = scalar_lea.vmem %s33_s19, 2048  ;;  %p1724_p4 = scmp.lt.s32.totalorder %s33_s19, %s33_s19 }
   0xc   :  { %p1720_p3 = scmp.ne.s32.totalorder %s33_s19, %s1719_s29  ;;  %p1725_p5 = scmp.lt.s32.totalorder %s1719_s29, %s1719_s29 }
   0xe   :  { %p1726_p6 = por %p1725_p5, %p1724_p4 }
  0x10   :  { %p1727_p7 = pnand %p1726_p6, %p1720_p3 }
  0x12   :  { %1730 = shalt.err (!%p1727_p7)
}
  0x13   :  { %s1869_s30 = smov 128   ;;  %s1870_s6 = smov 8  }
  0x14   :  { %38 = dma.hbm_to_vmem [thread:$0]  %s2391_s1, 2048, %s33_s19, [#allocation6], %s1869_s30, %s1869_s30, %s1870_s6  }
  0x15   :  { %s1731_s11 = scalar_lea.hbm %s2390_s0, 1024 }
  0x16   :  { %p1732_p8 = scmp.ne.s32.totalorder %s2390_s0, %s1731_s11  ;;  %p1735_p9 = scmp.lt.u32.totalorder %s1731_s11, %s2390_s0 }
  0x18   :  { %p1737_p10 = pnand %p1735_p9, %p1732_p8 }
  0x1a   :  { %1740 = shalt.err (!%p1737_p10)
}
  0x1b   :  { %s1741_s16 = scalar_lea.vmem %s1907_s21, 1024  ;;  %p1746_p12 = scmp.lt.s32.totalorder %s1907_s21, %s1907_s21 }
  0x1c   :  { %p1742_p11 = scmp.ne.s32.totalorder %s1907_s21, %s1741_s16  ;;  %p1747_p13 = scmp.lt.s32.totalorder %s1741_s16, %s1741_s16 }
  0x1e   :  { %p1748_p0 = por %p1747_p13, %p1746_p12 }
  0x20   :  { %p1749_p1 = pnand %p1748_p0, %p1742_p11 }
  0x22   :  { %1752 = shalt.err (!%p1749_p1)
}
  0x23   :  { %26 = dma.hbm_to_vmem [thread:$0]  %s2390_s0, 1024, %s1907_s21, [#allocation3], %s1869_s30, %s1869_s30, %s1870_s6  }
  0x24   :  { %s1871_s18 = smov [#allocation7]   ;;  %s1753_s23 = scalar_lea.hbm %s2392_s2, 256 }
  0x25   :  { %s44_s19 = sshll.u32 %s1871_s18, 4  ;;  %p1754_p2 = scmp.ne.s32.totalorder %s2392_s2, %s1753_s23  ;;  %s45_s19 = int_to_ptr.vmem [resolvable:$true] %s44_s19 }
  0x26   :  { %p1757_p3 = scmp.lt.u32.totalorder %s1753_s23, %s2392_s2 }
  0x28   :  { %p1759_p4 = pnand %p1757_p3, %p1754_p2 }
  0x2a   :  { %1762 = shalt.err (!%p1759_p4)
}
  0x2b   :  { %s1763_s28 = scalar_lea.vmem %s45_s19, 256  ;;  %p1768_p6 = scmp.lt.s32.totalorder %s45_s19, %s45_s19 }
  0x2c   :  { %p1764_p5 = scmp.ne.s32.totalorder %s45_s19, %s1763_s28  ;;  %p1769_p7 = scmp.lt.s32.totalorder %s1763_s28, %s1763_s28 }
  0x2e   :  { %p1770_p8 = por %p1769_p7, %p1768_p6 }
  0x30   :  { %p1771_p9 = pnand %p1770_p8, %p1764_p5 }
  0x32   :  { %1774 = shalt.err (!%p1771_p9)
}
  0x33   :  { %50 = dma.hbm_to_vmem [thread:$0]  %s2392_s2, 256, %s45_s19, [#allocation6], %s1869_s30, %s1869_s30, %s1870_s6  }
  0x34   :  { %1839 = dma.done.wait [#allocation3], 1024  }
  0x35   :  { %1840 = vsyncadd [#allocation3], 4294966272 }
  0x36   :  { %1841 = dma.done.wait [#allocation6], 2304  }
  0x37   :  { %1842 = vsyncadd [#allocation6], 4294964992  ;;  %v1959_v0 = vld [vmem:[#allocation7] sm:$0x1]  ;;  %v1961_v1 = vld [vmem:[#allocation7 + $0x1] sm:$0x1] }
  0x38   :  { %v1963_v2 = vld [vmem:[#allocation7 + $0x2] sm:$0x1]  ;;  %v1965_v3 = vld [vmem:[#allocation7 + $0x3] sm:$0x1]  ;;  %v1967_v4 = vld [vmem:[#allocation7 + $0x4] sm:$0x1] }
  0x39   :  { %v1969_v5 = vld [vmem:[#allocation7 + $0x5] sm:$0x1]  ;;  %v1971_v6 = vld [vmem:[#allocation7 + $0x6] sm:$0x1]  ;;  %v1973_v7 = vld [vmem:[#allocation7 + $0x7] sm:$0x1] }
  0x3a   :  { %v1975_v8 = vld [vmem:[#allocation7 + $0x8] sm:$0x1]  ;;  %v1977_v9 = vld [vmem:[#allocation5] sm:$0xff]  ;;  %v1981_v11 = vld [vmem:[#allocation5 + $0x10] sm:$0xff]  ;;  %s2020_s7 = smov 0  }
  0x3b   :  { %v1979_v10 = vld [vmem:[#allocation5 + $0x8] sm:$0xff]  ;;  %v1983_v12 = vld [vmem:[#allocation5 + $0x18] sm:$0xff]  ;;  %v1985_v13 = vld [vmem:[#allocation5 + $0x20] sm:$0xff] }
  0x3c   :  { %v1987_v14 = vld [vmem:[#allocation5 + $0x28] sm:$0xff]  ;;  %v1989_v15 = vld [vmem:[#allocation5 + $0x30] sm:$0xff]  ;;  %v1991_v16 = vld [vmem:[#allocation5 + $0x38] sm:$0xff] }
  0x3d   :  { %v1993_v17 = vld [vmem:[#allocation5 + $0x40] sm:$0xff]  ;;  %v1995_v18 = vld [vmem:[#allocation5 + $0x48] sm:$0xff]  ;;  %v1997_v19 = vld [vmem:[#allocation5 + $0x50] sm:$0xff] }
  0x3e   :  { %v1999_v20 = vld [vmem:[#allocation5 + $0x58] sm:$0xff]  ;;  %v2001_v21 = vld [vmem:[#allocation5 + $0x60] sm:$0xff]  ;;  %v2003_v22 = vld [vmem:[#allocation5 + $0x68] sm:$0xff] }
  0x3f   :  { %v2005_v23 = vld [vmem:[#allocation5 + $0x70] sm:$0xff]  ;;  %v2007_v24 = vld [vmem:[#allocation5 + $0x78] sm:$0xff]  ;;  %v66_v25 = vld [vmem:[%s2393_s3] sm:$0xff] }
  0x40   :  { %67 = vst [vmem:[#allocation9] sm:$0xff] %v66_v25 }
  0x47   :  { %v93_v26 = vld [vmem:[#allocation9] sm:$0x1]   ;;  %v94_v27 = vld [vmem:[#allocation9 + $0x1] sm:$0x1]   ;;  %v95_v28 = vld [vmem:[#allocation9 + $0x2] sm:$0x1]  }
  0x48   :  { %v96_v29 = vld [vmem:[#allocation9 + $0x3] sm:$0x1]  }
  0x49 LB: > { %v2039_v30 = vpack.c.bf16 %v1979_v10, %v1977_v9  ;;  %v1872_v31 = vmov 0.0|0.0   ;;  %v2045_v32 = vpack.c.bf16 %v1983_v12, %v1981_v11  ;;  %vm1873_vm0 = vmmov 0   ;;  %s1042_s3 = sshll.u32 %s1865_s7, 3  ;;  %s102_s7 = sadd.s32 1, %s1865_s7   ;;  %s1865_s7 = sphi %s2020_s7, %s102_s7   ;;  %v1861_v26 = vphi %v93_v26, %v2399_v26   ;;  %v1857_v27 = vphi %v94_v27, %v2398_v27   ;;  %v1853_v28 = vphi %v95_v28, %v2397_v28   ;;  %v1849_v29 = vphi %v96_v29, %v2396_v29  }
  0x4a   : > { %1467 = vmatprep.subr.bf16.mxu0 %v1872_v31  ;;  %1491 = vmatprep.subr.bf16.mxu1 %v1872_v31  ;;  %v1874_v33 = vmov 0.0   ;;  %v2058_v34 = vpack.c.bf16 %v1987_v14, %v1985_v13  ;;  %v2066_v35 = vpack.c.bf16 %v1991_v16, %v1989_v15  ;;  %v2074_v36 = vpack.c.bf16 %v1995_v18, %v1993_v17  ;;  %s108_s8 = scalar_lea.vmem [#allocation2], %s1042_s3  ;;  %s969_s9 = scalar_lea.vmem [#allocation8], %s1042_s3 }
  0x4b   : > { %1469 = vmatpush3.bf16.msra.mxu0 %v2039_v30  ;;  %1219 = vmatprep.mubr.msk.f32.mxu0 %vm1873_vm0, %v1874_v33  ;;  %v2082_v37 = vpack.c.bf16 %v1999_v20, %v1997_v19  ;;  %v2090_v38 = vpack.c.bf16 %v2003_v22, %v2001_v21  ;;  %v110_v39 = vadd.f32 %v1849_v29, %v1857_v27  ;;  %v109_v42 = vld [vmem:[%s108_s8] sm:$0xff]  ;;  %vm955_vm3 = vcmask 1040384   ;;  %p99_p10 = scmp.ge.s32.totalorder %s102_s7, 8  }
  0x4c   : > { %1470 = vmatprep.subr.bf16.mxu0 %v1872_v31  ;;  %1493 = vmatpush3.bf16.msra.mxu1 %v2039_v30  ;;  %v2100_v40 = vpack.c.bf16 %v2007_v24, %v2005_v23  ;;  %v2130_v43 = vmul.f32 1.75, %v109_v42  ;;  %v183_v44 = vsub.f32 %v1959_v0, %v1861_v26  ;;  %v194_v45 = vsub.f32 %v1861_v26, %v1959_v0  ;;  %s1875_s10 = smov (%p99_p10), [#allocation8]   ;;  %s1876_s12 = smov (%p99_p10), [#allocation9]  }
  0x4d   : > { %1254 = vmatprep.mubr.msk.f32.mxu1 %vm1873_vm0, %v1874_v33  ;;  %1494 = vmatprep.subr.bf16.mxu1 %v1872_v31  ;;  %v111_v41 = vmul.f32 0.5, %v110_v39  ;;  %v204_v52 = vmul.f32 %v1849_v29, %v1967_v4  ;;  %v208_v53 = vmul.f32 %v1857_v27, %v1975_v8  ;;  %vm957_vm5 = vcmask 1041408   ;;  %s994_s11 = sshll.u32 (%p99_p10), %s1875_s10, 4  ;;  %s1007_s13 = sshll.u32 (%p99_p10), %s1876_s12, 4  ;;  %s995_s11 = int_to_ptr.vmem [resolvable:$true] %s994_s11  ;;  %s1008_s13 = int_to_ptr.vmem [resolvable:$true] %s1007_s13 }
  0x4e   : > { %v184_v48 = vmul.f32 %v183_v44, %v1961_v1  ;;  %v195_v49 = vmul.f32 %v194_v45, %v1965_v3  ;;  %vm959_vm7 = vcmask 1042432   ;;  %vm961_vm9 = vcmask 1043456   ;;  %s1775_s14 = scalar_lea.vmem (%p99_p10), %s995_s11, 1024  ;;  %p1780_p12 = scmp.lt.s32.totalorder (%p99_p10), %s995_s11, %s995_s11 }
  0x4f   : > { %1472 = vmatpush3.bf16.msra.mxu0 %v2045_v32  ;;  %v205_v57 = vsub.f32 %v1849_v29, %v204_v52  ;;  %v209_v58 = vsub.f32 %v1857_v27, %v208_v53  ;;  %v215_v27 = vrot.slane %v2130_v43, 1  ;;  %vm963_vm11 = vcmask 1044480   ;;  %p1776_p11 = scmp.ne.s32.totalorder (%p99_p10), %s995_s11, %s1775_s14  ;;  %p1781_p13 = scmp.lt.s32.totalorder (%p99_p10), %s1775_s14, %s1775_s14 }
  0x50   : > { %1473 = vmatprep.subr.bf16.mxu0 %v1872_v31  ;;  %1496 = vmatpush3.bf16.msra.mxu1 %v2045_v32  ;;  %v196_v55 = vadd.f32 %v195_v49, %v1959_v0  ;;  %vm965_vm13 = vcmask 1045504   ;;  %vm967_vm15 = vcmask 1046528  }
  0x51   : > { %1497 = vmatprep.subr.bf16.mxu1 %v1872_v31  ;;  %p1782_p0 = por (%p99_p10), %p1781_p13, %p1780_p12 }
  0x52   : > { %v197_v59 = vsub.f32 %v196_v55, %v1973_v7 }
  0x53   : > { %1475 = vmatpush3.bf16.msra.mxu0 %v2058_v34  ;;  %p1783_p1 = pnand (%p99_p10), %p1782_p0, %p1776_p11 }
  0x54   : > { %1476 = vmatprep.subr.bf16.mxu0 %v1872_v31  ;;  %1499 = vmatpush3.bf16.msra.mxu1 %v2058_v34 }
  0x55   : > { %1500 = vmatprep.subr.bf16.mxu1 %v1872_v31 }
  0x57   : > { %1478 = vmatpush3.bf16.msra.mxu0 %v2066_v35 }
  0x58   : > { %1479 = vmatprep.subr.bf16.mxu0 %v1872_v31  ;;  %1502 = vmatpush3.bf16.msra.mxu1 %v2066_v35 }
  0x59   : > { %1503 = vmatprep.subr.bf16.mxu1 %v1872_v31 }
  0x5b   : > { %1481 = vmatpush3.bf16.msra.mxu0 %v2074_v36 }
  0x5c   : > { %1482 = vmatprep.subr.bf16.mxu0 %v1872_v31  ;;  %1505 = vmatpush3.bf16.msra.mxu1 %v2074_v36 }
  0x5d   : > { %1506 = vmatprep.subr.bf16.mxu1 %v1872_v31 }
  0x5f   : > { %1484 = vmatpush3.bf16.msra.mxu0 %v2082_v37 }
  0x60   : > { %1485 = vmatprep.subr.bf16.mxu0 %v1872_v31  ;;  %1508 = vmatpush3.bf16.msra.mxu1 %v2082_v37 }
  0x61   : > { %1509 = vmatprep.subr.bf16.mxu1 %v1872_v31 }
  0x63   : > { %1487 = vmatpush3.bf16.msra.mxu0 %v2090_v38 }
  0x64   : > { %1488 = vmatprep.subr.bf16.mxu0 %v1872_v31  ;;  %1511 = vmatpush3.bf16.msra.mxu1 %v2090_v38 }
  0x65   : > { %1512 = vmatprep.subr.bf16.mxu1 %v1872_v31 }
  0x67   : > { %1490 = vmatpush3.bf16.msra.mxu0 %v2100_v40 }
  0x68   : > { %1515 = vmatprep.subr.bf16.mxu0 %v1872_v31  ;;  %1514 = vmatpush3.bf16.msra.mxu1 %v2100_v40 }
  0x69   : > { %1539 = vmatprep.subr.bf16.mxu1 %v1872_v31 }
  0x6a   : > { %1220 = vmatmul.mubr.f32.vlgmr.msra.gmra.mrb[0].mxu0 %v111_v41 }
  0x6b   : > { %1517 = vmatpush3.bf16.msra.mxu0 %v2039_v30  ;;  %1289 = vmatprep.mubr.msk.f32.mxu0 %vm1873_vm0, %v1874_v33 }
  0x6c   : > { %1518 = vmatprep.subr.bf16.mxu0 %v1872_v31 }
  0x6f   : > { %1520 = vmatpush3.bf16.msra.mxu0 %v2045_v32 }
  0x70   : > { %1521 = vmatprep.subr.bf16.mxu0 %v1872_v31 }
  0x73   : > { %1523 = vmatpush3.bf16.msra.mxu0 %v2058_v34 }
  0x74   : > { %1524 = vmatprep.subr.bf16.mxu0 %v1872_v31 }
  0x77   : > { %1526 = vmatpush3.bf16.msra.mxu0 %v2066_v35 }
  0x78   : > { %1527 = vmatprep.subr.bf16.mxu0 %v1872_v31 }
  0x7b   : > { %1529 = vmatpush3.bf16.msra.mxu0 %v2074_v36 }
  0x7c   : > { %1530 = vmatprep.subr.bf16.mxu0 %v1872_v31 }
  0x7f   : > { %1532 = vmatpush3.bf16.msra.mxu0 %v2082_v37 }
  0x80   : > { %1533 = vmatprep.subr.bf16.mxu0 %v1872_v31 }
  0x83   : > { %1535 = vmatpush3.bf16.msra.mxu0 %v2090_v38 }
  0x84   : > { %1536 = vmatprep.subr.bf16.mxu0 %v1872_v31 }
  0x87   : > { %1538 = vmatpush3.bf16.msra.mxu0 %v2100_v40 }
  0x88   : > { %1563 = vmatprep.subr.bf16.mxu0 %v1872_v31 }
 0x13d   : > { %v179_v46 = vpop.f32.mrb[0].mxu0 }
 0x13e   : > { %v180_v47 = vadd.f32 %v179_v46, %v2130_v43  ;;  %v1221_v50 = vpop.f32.mrb[1].mxu0 }
 0x140   : > { %v185_v51 = vmul.f32 %v180_v47, %v1963_v2 }
 0x142   : > { %v186_v54 = vadd.f32 %v185_v51, %v184_v48  ;;  %v201_v51 = vmul.f32 %v1853_v28, %v1971_v6 }
 0x144   : > { %v187_v56 = vadd.f32 %v1861_v26, %v186_v54 }
 0x146   : > { %vm190_vm1 = vcmp.ge.f32.partialorder %v187_v56, %v1853_v28 }
 0x147   : > { %v1043_v60 = vsel %vm190_vm1, 1.0, %v1874_v33 }
 0x148   : > { %v193_v61 = vsub.f32 1.0, %v1043_v60  ;;  %v206_v62 = vmul.f32 %v1043_v60, %v1967_v4  ;;  %v198_v41 = vmul.f32 %v1043_v60, %v197_v59  ;;  %v202_v52 = vmul.f32 %v1043_v60, %v1969_v5 }
 0x14a   : > { %v199_v63 = vmul.f32 %v193_v61, %v187_v56  ;;  %v207_v25 = vadd.f32 %v206_v62, %v205_v57  ;;  %v210_v39 = vmul.f32 %v209_v58, %v193_v61  ;;  %v203_v61 = vadd.f32 %v202_v52, %v201_v51 }
 0x14c   : > { %v211_v42 = vadd.f32 %v1043_v60, %v210_v39  ;;  %v200_v44 = vadd.f32 %v199_v63, %v198_v41  ;;  %v308_v57 = vmul.f32 %v207_v25, %v1967_v4  ;;  %v188_v63 = vsub.f32 %v187_v56, %v1853_v28 }
 0x14e   : > { %v212_v26 = vadd.f32 %v211_v42, %v207_v25  ;;  %v298_v29 = vsub.f32 %v200_v44, %v1959_v0  ;;  %v287_v46 = vsub.f32 %v1959_v0, %v200_v44  ;;  %v312_v59 = vmul.f32 %v211_v42, %v1975_v8 }
 0x14f   : > { %v309_v41 = vsub.f32 %v207_v25, %v308_v57 }
 0x150   : > { %v213_v45 = vmul.f32 0.5, %v212_v26  ;;  %v299_v50 = vmul.f32 %v298_v29, %v1965_v3  ;;  %v288_v53 = vmul.f32 %v287_v46, %v1961_v1 }
 0x152   : > { %1255 = vmatmul.mubr.f32.vlgmr.msra.gmra.mrb[0].mxu1 %v213_v45  ;;  %v300_v58 = vadd.f32 %v299_v50, %v1959_v0  ;;  %v313_v45 = vsub.f32 %v211_v42, %v312_v59  ;;  %v318_v42 = vrot.slane %v2130_v43, 2 }
 0x153   : > { %1541 = vmatpush3.bf16.msra.mxu1 %v2039_v30  ;;  %1324 = vmatprep.mubr.msk.f32.mxu1 %vm1873_vm0, %v1874_v33 }
 0x154   : > { %1542 = vmatprep.subr.bf16.mxu1 %v1872_v31  ;;  %v301_v26 = vsub.f32 %v300_v58, %v1973_v7 }
 0x157   : > { %1544 = vmatpush3.bf16.msra.mxu1 %v2045_v32 }
 0x158   : > { %1545 = vmatprep.subr.bf16.mxu1 %v1872_v31 }
 0x15b   : > { %1547 = vmatpush3.bf16.msra.mxu1 %v2058_v34 }
 0x15c   : > { %1548 = vmatprep.subr.bf16.mxu1 %v1872_v31 }
 0x15f   : > { %1550 = vmatpush3.bf16.msra.mxu1 %v2066_v35 }
 0x160   : > { %1551 = vmatprep.subr.bf16.mxu1 %v1872_v31 }
 0x163   : > { %1553 = vmatpush3.bf16.msra.mxu1 %v2074_v36 }
 0x164   : > { %1554 = vmatprep.subr.bf16.mxu1 %v1872_v31 }
 0x167   : > { %1556 = vmatpush3.bf16.msra.mxu1 %v2082_v37 }
 0x168   : > { %1557 = vmatprep.subr.bf16.mxu1 %v1872_v31 }
 0x16b   : > { %1559 = vmatpush3.bf16.msra.mxu1 %v2090_v38 }
 0x16c   : > { %1560 = vmatprep.subr.bf16.mxu1 %v1872_v31 }
 0x16f   : > { %1562 = vmatpush3.bf16.msra.mxu1 %v2100_v40 }
 0x170   : > { %1587 = vmatprep.subr.bf16.mxu1 %v1872_v31 }
 0x225   : > { %v283_v47 = vpop.f32.mrb[0].mxu1 }
 0x226   : > { %v284_v48 = vadd.f32 %v283_v47, %v215_v27  ;;  %v1256_v49 = vpop.f32.mrb[1].mxu1  ;;  %v189_v47 = vmax.f32 %v188_v63, 0.0 }
 0x228   : > { %v289_v54 = vmul.f32 %v284_v48, %v1963_v2 }
 0x22a   : > { %v290_v55 = vadd.f32 %v289_v54, %v288_v53 }
 0x22c   : > { %v291_v62 = vadd.f32 %v290_v55, %v200_v44 }
 0x22e   : > { %v292_v39 = vsub.f32 %v291_v62, %v203_v61  ;;  %vm294_vm2 = vcmp.ge.f32.partialorder %v291_v62, %v203_v61 }
 0x22f   : > { %v1044_v60 = vsel %vm294_vm2, 1.0, %v1874_v33 }
 0x230   : > { %v293_v27 = vmax.f32 %v292_v39, 0.0  ;;  %v297_v29 = vsub.f32 1.0, %v1044_v60  ;;  %v310_v46 = vmul.f32 %v1044_v60, %v1967_v4  ;;  %v302_v48 = vmul.f32 %v1044_v60, %v301_v26 }
 0x231   : > { %v306_v63 = vmul.f32 %v1044_v60, %v1969_v5  ;;  %v305_v26 = vmul.f32 %v203_v61, %v1971_v6 }
 0x232   : > { %v303_v49 = vmul.f32 %v297_v29, %v291_v62  ;;  %v314_v50 = vmul.f32 %v313_v45, %v297_v29  ;;  %v935_v44 = vrot.slane %v293_v27, 7  ;;  %v311_v51 = vadd.f32 %v310_v46, %v309_v41 }
 0x234   : > { %v956_v28 = vsel %vm955_vm3, %v189_v47, %v935_v44  ;;  %v315_v56 = vadd.f32 %v1044_v60, %v314_v50  ;;  %v304_v25 = vadd.f32 %v303_v49, %v302_v48  ;;  %v411_v27 = vmul.f32 %v311_v51, %v1967_v4 }
 0x235   : > { %v307_v47 = vadd.f32 %v306_v63, %v305_v26 }
 0x236   : > { %v316_v52 = vadd.f32 %v315_v56, %v311_v51  ;;  %v401_v54 = vsub.f32 %v304_v25, %v1959_v0  ;;  %v390_v55 = vsub.f32 %v1959_v0, %v304_v25  ;;  %v415_v46 = vmul.f32 %v315_v56, %v1975_v8 }
 0x237   : > { %v412_v60 = vsub.f32 %v311_v51, %v411_v27  ;;  %v421_v51 = vrot.slane %v2130_v43, 3 }
 0x238   : > { %v317_v53 = vmul.f32 0.5, %v316_v52  ;;  %v402_v62 = vmul.f32 %v401_v54, %v1965_v3  ;;  %v391_v39 = vmul.f32 %v390_v55, %v1961_v1 }
 0x23a   : > { %1290 = vmatmul.mubr.f32.vlgmr.msra.gmra.mrb[2].mxu0 %v317_v53  ;;  %v403_v29 = vadd.f32 %v402_v62, %v1959_v0 }
 0x23b   : > { %1565 = vmatpush3.bf16.msra.mxu0 %v2039_v30  ;;  %1359 = vmatprep.mubr.msk.f32.mxu0 %vm1873_vm0, %v1874_v33 }
 0x23c   : > { %1566 = vmatprep.subr.bf16.mxu0 %v1872_v31  ;;  %v404_v44 = vsub.f32 %v403_v29, %v1973_v7 }
 0x23f   : > { %1568 = vmatpush3.bf16.msra.mxu0 %v2045_v32 }
 0x240   : > { %1569 = vmatprep.subr.bf16.mxu0 %v1872_v31 }
 0x243   : > { %1571 = vmatpush3.bf16.msra.mxu0 %v2058_v34 }
 0x244   : > { %1572 = vmatprep.subr.bf16.mxu0 %v1872_v31 }
 0x247   : > { %1574 = vmatpush3.bf16.msra.mxu0 %v2066_v35 }
 0x248   : > { %1575 = vmatprep.subr.bf16.mxu0 %v1872_v31 }
 0x24b   : > { %1577 = vmatpush3.bf16.msra.mxu0 %v2074_v36 }
 0x24c   : > { %1578 = vmatprep.subr.bf16.mxu0 %v1872_v31 }
 0x24f   : > { %1580 = vmatpush3.bf16.msra.mxu0 %v2082_v37 }
 0x250   : > { %1581 = vmatprep.subr.bf16.mxu0 %v1872_v31 }
 0x253   : > { %1583 = vmatpush3.bf16.msra.mxu0 %v2090_v38 }
 0x254   : > { %1584 = vmatprep.subr.bf16.mxu0 %v1872_v31 }
 0x257   : > { %1586 = vmatpush3.bf16.msra.mxu0 %v2100_v40 }
 0x258   : > { %1611 = vmatprep.subr.bf16.mxu0 %v1872_v31 }
 0x30d   : > { %v386_v57 = vpop.f32.mrb[2].mxu0 }
 0x30e   : > { %v387_v58 = vadd.f32 %v386_v57, %v318_v42  ;;  %v1291_v59 = vpop.f32.mrb[3].mxu0  ;;  %v416_v42 = vsub.f32 %v315_v56, %v415_v46 }
 0x310   : > { %v392_v41 = vmul.f32 %v387_v58, %v1963_v2 }
 0x312   : > { %v393_v45 = vadd.f32 %v392_v41, %v391_v39 }
 0x314   : > { %v394_v48 = vadd.f32 %v393_v45, %v304_v25 }
 0x316   : > { %v395_v49 = vsub.f32 %v394_v48, %v307_v47  ;;  %vm397_vm4 = vcmp.ge.f32.partialorder %v394_v48, %v307_v47 }
 0x317   : > { %v1045_v50 = vsel %vm397_vm4, 1.0, %v1874_v33 }
 0x318   : > { %v396_v52 = vmax.f32 %v395_v49, 0.0  ;;  %v400_v53 = vsub.f32 1.0, %v1045_v50  ;;  %v413_v61 = vmul.f32 %v1045_v50, %v1967_v4  ;;  %v405_v54 = vmul.f32 %v1045_v50, %v404_v44 }
 0x319   : > { %v409_v46 = vmul.f32 %v1045_v50, %v1969_v5 }
 0x31a   : > { %v406_v55 = vmul.f32 %v400_v53, %v394_v48  ;;  %v417_v57 = vmul.f32 %v416_v42, %v400_v53  ;;  %v938_v58 = vrot.slane %v396_v52, 6  ;;  %v414_v59 = vadd.f32 %v413_v61, %v412_v60 }
 0x31b   : > { %v408_v60 = vmul.f32 %v307_v47, %v1971_v6 }
 0x31c   : > { %v958_v25 = vsel %vm957_vm5, %v956_v28, %v938_v58  ;;  %v418_v62 = vadd.f32 %v1045_v50, %v417_v57  ;;  %v407_v63 = vadd.f32 %v406_v55, %v405_v54  ;;  %v514_v52 = vmul.f32 %v414_v59, %v1967_v4 }
 0x31d   : > { %v410_v61 = vadd.f32 %v409_v46, %v408_v60 }
 0x31e   : > { %v419_v39 = vadd.f32 %v418_v62, %v414_v59  ;;  %v504_v28 = vsub.f32 %v407_v63, %v1959_v0  ;;  %v493_v56 = vsub.f32 %v1959_v0, %v407_v63  ;;  %v518_v42 = vmul.f32 %v418_v62, %v1975_v8 }
 0x31f   : > { %v515_v50 = vsub.f32 %v414_v59, %v514_v52  ;;  %v524_v59 = vrot.slane %v2130_v43, 4 }
 0x320   : > { %v420_v41 = vmul.f32 0.5, %v419_v39  ;;  %v505_v29 = vmul.f32 %v504_v28, %v1965_v3  ;;  %v494_v48 = vmul.f32 %v493_v56, %v1961_v1 }
 0x322   : > { %1325 = vmatmul.mubr.f32.vlgmr.msra.gmra.mrb[2].mxu1 %v420_v41  ;;  %v506_v53 = vadd.f32 %v505_v29, %v1959_v0 }
 0x323   : > { %1589 = vmatpush3.bf16.msra.mxu1 %v2039_v30  ;;  %1394 = vmatprep.mubr.msk.f32.mxu1 %vm1873_vm0, %v1874_v33 }
 0x324   : > { %1590 = vmatprep.subr.bf16.mxu1 %v1872_v31  ;;  %v507_v58 = vsub.f32 %v506_v53, %v1973_v7 }
 0x327   : > { %1592 = vmatpush3.bf16.msra.mxu1 %v2045_v32 }
 0x328   : > { %1593 = vmatprep.subr.bf16.mxu1 %v1872_v31 }
 0x32b   : > { %1595 = vmatpush3.bf16.msra.mxu1 %v2058_v34 }
 0x32c   : > { %1596 = vmatprep.subr.bf16.mxu1 %v1872_v31 }
 0x32f   : > { %1598 = vmatpush3.bf16.msra.mxu1 %v2066_v35 }
 0x330   : > { %1599 = vmatprep.subr.bf16.mxu1 %v1872_v31 }
 0x333   : > { %1601 = vmatpush3.bf16.msra.mxu1 %v2074_v36 }
 0x334   : > { %1602 = vmatprep.subr.bf16.mxu1 %v1872_v31 }
 0x337   : > { %1604 = vmatpush3.bf16.msra.mxu1 %v2082_v37 }
 0x338   : > { %1605 = vmatprep.subr.bf16.mxu1 %v1872_v31 }
 0x33b   : > { %1607 = vmatpush3.bf16.msra.mxu1 %v2090_v38 }
 0x33c   : > { %1608 = vmatprep.subr.bf16.mxu1 %v1872_v31 }
 0x33f   : > { %1610 = vmatpush3.bf16.msra.mxu1 %v2100_v40 }
 0x340   : > { %1635 = vmatprep.subr.bf16.mxu1 %v1872_v31 }
 0x3f5   : > { %v489_v26 = vpop.f32.mrb[2].mxu1 }
 0x3f6   : > { %v490_v45 = vadd.f32 %v489_v26, %v421_v51  ;;  %v1326_v27 = vpop.f32.mrb[3].mxu1  ;;  %v519_v51 = vsub.f32 %v418_v62, %v518_v42 }
 0x3f8   : > { %v495_v49 = vmul.f32 %v490_v45, %v1963_v2 }
 0x3fa   : > { %v496_v44 = vadd.f32 %v495_v49, %v494_v48 }
 0x3fc   : > { %v497_v54 = vadd.f32 %v496_v44, %v407_v63 }
 0x3fe   : > { %v498_v55 = vsub.f32 %v497_v54, %v410_v61  ;;  %vm500_vm6 = vcmp.ge.f32.partialorder %v497_v54, %v410_v61 }
 0x3ff   : > { %v1046_v57 = vsel %vm500_vm6, 1.0, %v1874_v33 }
 0x400   : > { %v499_v39 = vmax.f32 %v498_v55, 0.0  ;;  %v503_v41 = vsub.f32 1.0, %v1046_v57  ;;  %v516_v47 = vmul.f32 %v1046_v57, %v1967_v4  ;;  %v508_v28 = vmul.f32 %v1046_v57, %v507_v58 }
 0x401   : > { %v512_v42 = vmul.f32 %v1046_v57, %v1969_v5 }
 0x402   : > { %v509_v56 = vmul.f32 %v503_v41, %v497_v54  ;;  %v520_v26 = vmul.f32 %v519_v51, %v503_v41  ;;  %v941_v45 = vrot.slane %v499_v39, 5  ;;  %v517_v27 = vadd.f32 %v516_v47, %v515_v50 }
 0x403   : > { %v511_v50 = vmul.f32 %v410_v61, %v1971_v6 }
 0x404   : > { %v960_v63 = vsel %vm959_vm7, %v958_v25, %v941_v45  ;;  %v521_v29 = vadd.f32 %v1046_v57, %v520_v26  ;;  %v510_v46 = vadd.f32 %v509_v56, %v508_v28  ;;  %v617_v39 = vmul.f32 %v517_v27, %v1967_v4 }
 0x405   : > { %v513_v47 = vadd.f32 %v512_v42, %v511_v50 }
 0x406   : > { %v522_v48 = vadd.f32 %v521_v29, %v517_v27  ;;  %v607_v25 = vsub.f32 %v510_v46, %v1959_v0  ;;  %v596_v62 = vsub.f32 %v1959_v0, %v510_v46  ;;  %v621_v51 = vmul.f32 %v521_v29, %v1975_v8 }
 0x407   : > { %v618_v57 = vsub.f32 %v517_v27, %v617_v39 }
 0x408   : > { %v523_v49 = vmul.f32 0.5, %v522_v48  ;;  %v608_v53 = vmul.f32 %v607_v25, %v1965_v3  ;;  %v597_v54 = vmul.f32 %v596_v62, %v1961_v1 }
 0x40a   : > { %1360 = vmatmul.mubr.f32.vlgmr.msra.gmra.mrb[4].mxu0 %v523_v49  ;;  %v609_v41 = vadd.f32 %v608_v53, %v1959_v0 }
 0x40b   : > { %1613 = vmatpush3.bf16.msra.mxu0 %v2039_v30  ;;  %1429 = vmatprep.mubr.msk.f32.mxu0 %vm1873_vm0, %v1874_v33 }
 0x40c   : > { %1614 = vmatprep.subr.bf16.mxu0 %v1872_v31  ;;  %v610_v45 = vsub.f32 %v609_v41, %v1973_v7 }
 0x40f   : > { %1616 = vmatpush3.bf16.msra.mxu0 %v2045_v32 }
 0x410   : > { %1617 = vmatprep.subr.bf16.mxu0 %v1872_v31 }
 0x413   : > { %1619 = vmatpush3.bf16.msra.mxu0 %v2058_v34 }
 0x414   : > { %1620 = vmatprep.subr.bf16.mxu0 %v1872_v31 }
 0x417   : > { %1622 = vmatpush3.bf16.msra.mxu0 %v2066_v35 }
 0x418   : > { %1623 = vmatprep.subr.bf16.mxu0 %v1872_v31 }
 0x41b   : > { %1625 = vmatpush3.bf16.msra.mxu0 %v2074_v36 }
 0x41c   : > { %1626 = vmatprep.subr.bf16.mxu0 %v1872_v31 }
 0x41f   : > { %1628 = vmatpush3.bf16.msra.mxu0 %v2082_v37 }
 0x420   : > { %1629 = vmatprep.subr.bf16.mxu0 %v1872_v31 }
 0x423   : > { %1631 = vmatpush3.bf16.msra.mxu0 %v2090_v38 }
 0x424   : > { %1632 = vmatprep.subr.bf16.mxu0 %v1872_v31 }
 0x427   : > { %1634 = vmatpush3.bf16.msra.mxu0 %v2100_v40 }
 0x4dd   : > { %v592_v60 = vpop.f32.mrb[4].mxu0 }
 0x4de   : > { %v593_v44 = vadd.f32 %v592_v60, %v524_v59  ;;  %v1361_v52 = vpop.f32.mrb[5].mxu0  ;;  %v622_v59 = vsub.f32 %v521_v29, %v621_v51 }
 0x4e0   : > { %v598_v55 = vmul.f32 %v593_v44, %v1963_v2 }
 0x4e2   : > { %v599_v58 = vadd.f32 %v598_v55, %v597_v54 }
 0x4e4   : > { %v600_v28 = vadd.f32 %v599_v58, %v510_v46 }
 0x4e6   : > { %v601_v56 = vsub.f32 %v600_v28, %v513_v47  ;;  %vm603_vm8 = vcmp.ge.f32.partialorder %v600_v28, %v513_v47 }
 0x4e7   : > { %v1047_v26 = vsel %vm603_vm8, 1.0, %v1874_v33 }
 0x4e8   : > { %v602_v48 = vmax.f32 %v601_v56, 0.0  ;;  %v606_v49 = vsub.f32 1.0, %v1047_v26  ;;  %v619_v61 = vmul.f32 %v1047_v26, %v1967_v4  ;;  %v611_v25 = vmul.f32 %v1047_v26, %v610_v45 }
 0x4ea   : > { %v612_v62 = vmul.f32 %v606_v49, %v600_v28  ;;  %v623_v60 = vmul.f32 %v622_v59, %v606_v49  ;;  %v944_v44 = vrot.slane %v602_v48, 4  ;;  %v620_v52 = vadd.f32 %v619_v61, %v618_v57 }
 0x4ec   : > { %v962_v46 = vsel %vm961_vm9, %v960_v63, %v944_v44  ;;  %v624_v53 = vadd.f32 %v1047_v26, %v623_v60  ;;  %v613_v42 = vadd.f32 %v612_v62, %v611_v25  ;;  %v720_v50 = vmul.f32 %v620_v52, %v1967_v4 }
 0x4ee   : > { %v625_v54 = vadd.f32 %v624_v53, %v620_v52  ;;  %v724_v39 = vmul.f32 %v624_v53, %v1975_v8 }
 0x4f0   : > { %v626_v55 = vmul.f32 0.5, %v625_v54  ;;  %v725_v49 = vsub.f32 %v624_v53, %v724_v39 }
 0x4f2   : > { %1395 = vmatmul.mubr.f32.vlgmr.msra.gmra.mrb[4].mxu1 %v626_v55 }
 0x4f3   : > { %1637 = vmatpush3.bf16.msra.mxu1 %v2039_v30  ;;  %1464 = vmatprep.mubr.msk.f32.mxu1 %vm1873_vm0, %v1874_v33  ;;  %v627_v30 = vrot.slane %v2130_v43, 5 }
 0x4f4   : > { %1638 = vmatprep.subr.bf16.mxu1 %v1872_v31 }
 0x4f7   : > { %1640 = vmatpush3.bf16.msra.mxu1 %v2045_v32  ;;  %v710_v32 = vsub.f32 %v613_v42, %v1959_v0 }
 0x4f8   : > { %1641 = vmatprep.subr.bf16.mxu1 %v1872_v31 }
 0x4f9   : > { %v711_v63 = vmul.f32 %v710_v32, %v1965_v3 }
 0x4fb   : > { %1643 = vmatpush3.bf16.msra.mxu1 %v2058_v34  ;;  %v699_v34 = vsub.f32 %v1959_v0, %v613_v42  ;;  %v712_v58 = vadd.f32 %v711_v63, %v1959_v0 }
 0x4fc   : > { %1644 = vmatprep.subr.bf16.mxu1 %v1872_v31 }
 0x4fd   : > { %v700_v29 = vmul.f32 %v699_v34, %v1961_v1  ;;  %v713_v57 = vsub.f32 %v712_v58, %v1973_v7 }
 0x4ff   : > { %1646 = vmatpush3.bf16.msra.mxu1 %v2066_v35 }
 0x500   : > { %1647 = vmatprep.subr.bf16.mxu1 %v1872_v31 }
 0x503   : > { %1649 = vmatpush3.bf16.msra.mxu1 %v2074_v36 }
 0x504   : > { %1650 = vmatprep.subr.bf16.mxu1 %v1872_v31 }
 0x507   : > { %1652 = vmatpush3.bf16.msra.mxu1 %v2082_v37  ;;  %v615_v37 = vmul.f32 %v1047_v26, %v1969_v5  ;;  %v721_v26 = vsub.f32 %v620_v52, %v720_v50  ;;  %v730_v52 = vrot.slane %v2130_v43, 6 }
 0x508   : > { %1653 = vmatprep.subr.bf16.mxu1 %v1872_v31 }
 0x50b   : > { %1655 = vmatpush3.bf16.msra.mxu1 %v2090_v38 }
 0x50c   : > { %1656 = vmatprep.subr.bf16.mxu1 %v1872_v31  ;;  %v614_v31 = vmul.f32 %v513_v47, %v1971_v6 }
 0x50e   : > { %v616_v41 = vadd.f32 %v615_v37, %v614_v31 }
 0x50f   : > { %1658 = vmatpush3.bf16.msra.mxu1 %v2100_v40 }
 0x5c5   : > { %v695_v35 = vpop.f32.mrb[4].mxu1 }
 0x5c6   : > { %v696_v36 = vadd.f32 %v695_v35, %v627_v30  ;;  %v1396_v27 = vpop.f32.mrb[5].mxu1 }
 0x5c8   : > { %v701_v38 = vmul.f32 %v696_v36, %v1963_v2 }
 0x5ca   : > { %v702_v40 = vadd.f32 %v701_v38, %v700_v29  ;;  %v717_v29 = vmul.f32 %v616_v41, %v1971_v6 }
 0x5cc   : > { %v703_v51 = vadd.f32 %v702_v40, %v613_v42 }
 0x5ce   : > { %v704_v28 = vsub.f32 %v703_v51, %v616_v41  ;;  %vm706_vm10 = vcmp.ge.f32.partialorder %v703_v51, %v616_v41 }
 0x5cf   : > { %v1048_v56 = vsel %vm706_vm10, 1.0, %v1874_v33 }
 0x5d0   : > { %v705_v45 = vmax.f32 %v704_v28, 0.0  ;;  %v709_v48 = vsub.f32 1.0, %v1048_v56  ;;  %v722_v47 = vmul.f32 %v1048_v56, %v1967_v4  ;;  %v714_v59 = vmul.f32 %v1048_v56, %v713_v57 }
 0x5d1   : > { %v718_v63 = vmul.f32 %v1048_v56, %v1969_v5 }
 0x5d2   : > { %v715_v61 = vmul.f32 %v709_v48, %v703_v51  ;;  %v726_v25 = vmul.f32 %v725_v49, %v709_v48  ;;  %v947_v62 = vrot.slane %v705_v45, 3  ;;  %v723_v60 = vadd.f32 %v722_v47, %v721_v26 }
 0x5d3   : > { %v719_v58 = vadd.f32 %v718_v63, %v717_v29 }
 0x5d4   : > { %v964_v44 = vsel %vm963_vm11, %v962_v46, %v947_v62  ;;  %v727_v42 = vadd.f32 %v1048_v56, %v726_v25  ;;  %v716_v54 = vadd.f32 %v715_v61, %v714_v59  ;;  %v823_v31 = vmul.f32 %v723_v60, %v1967_v4 }
 0x5d6   : > { %v728_v55 = vadd.f32 %v727_v42, %v723_v60  ;;  %v813_v32 = vsub.f32 %v716_v54, %v1959_v0  ;;  %v802_v53 = vsub.f32 %v1959_v0, %v716_v54  ;;  %v827_v50 = vmul.f32 %v727_v42, %v1975_v8 }
 0x5d7   : > { %v824_v56 = vsub.f32 %v723_v60, %v823_v31  ;;  %v833_v60 = vrot.slane %v2130_v43, 7 }
 0x5d8   : > { %v729_v30 = vmul.f32 0.5, %v728_v55  ;;  %v814_v27 = vmul.f32 %v813_v32, %v1965_v3  ;;  %v803_v46 = vmul.f32 %v802_v53, %v1961_v1  ;;  %v828_v48 = vsub.f32 %v727_v42, %v827_v50 }
 0x5da   : > { %1430 = vmatmul.mubr.f32.vlgmr.msra.gmra.mrb[6].mxu0 %v729_v30  ;;  %v815_v40 = vadd.f32 %v814_v27, %v1959_v0 }
 0x5dc   : > { %v816_v26 = vsub.f32 %v815_v40, %v1973_v7 }
 0x6ad   : > { %v798_v34 = vpop.f32.mrb[6].mxu0 }
 0x6ae   : > { %v799_v35 = vadd.f32 %v798_v34, %v730_v52  ;;  %v1431_v36 = vpop.f32.mrb[7].mxu0 }
 0x6b0   : > { %v804_v37 = vmul.f32 %v799_v35, %v1963_v2 }
 0x6b2   : > { %v805_v38 = vadd.f32 %v804_v37, %v803_v46  ;;  %v820_v46 = vmul.f32 %v719_v58, %v1971_v6 }
 0x6b4   : > { %v806_v39 = vadd.f32 %v805_v38, %v716_v54 }
 0x6b6   : > { %v807_v51 = vsub.f32 %v806_v39, %v719_v58  ;;  %vm809_vm12 = vcmp.ge.f32.partialorder %v806_v39, %v719_v58 }
 0x6b7   : > { %v1049_v28 = vsel %vm809_vm12, 1.0, %v1874_v33 }
 0x6b8   : > { %v808_v57 = vmax.f32 %v807_v51, 0.0  ;;  %v812_v45 = vsub.f32 1.0, %v1049_v28  ;;  %v825_v41 = vmul.f32 %v1049_v28, %v1967_v4  ;;  %v817_v49 = vmul.f32 %v1049_v28, %v816_v26 }
 0x6b9   : > { %v821_v27 = vmul.f32 %v1049_v28, %v1969_v5 }
 0x6ba   : > { %v818_v47 = vmul.f32 %v812_v45, %v806_v39  ;;  %v829_v59 = vmul.f32 %v828_v48, %v812_v45  ;;  %v950_v61 = vrot.slane %v808_v57, 2  ;;  %v826_v25 = vadd.f32 %v825_v41, %v824_v56 }
 0x6bb   : > { %v822_v38 = vadd.f32 %v821_v27, %v820_v46 }
 0x6bc   : > { %v966_v62 = vsel %vm965_vm13, %v964_v44, %v950_v61  ;;  %v830_v54 = vadd.f32 %v1049_v28, %v829_v59  ;;  %v819_v55 = vadd.f32 %v818_v47, %v817_v49  ;;  %v926_v40 = vmul.f32 %v826_v25, %v1967_v4 }
 0x6bd   : > { %v923_v28 = vmul.f32 %v822_v38, %v1971_v6 }
 0x6be   : > { %v831_v30 = vadd.f32 %v830_v54, %v826_v25  ;;  %v916_v32 = vsub.f32 %v819_v55, %v1959_v0  ;;  %v905_v42 = vsub.f32 %v1959_v0, %v819_v55  ;;  %v930_v29 = vmul.f32 %v830_v54, %v1975_v8 }
 0x6bf   : > { %v927_v48 = vsub.f32 %v826_v25, %v926_v40 }
 0x6c0   : > { %v832_v52 = vmul.f32 0.5, %v831_v30  ;;  %v917_v35 = vmul.f32 %v916_v32, %v1965_v3  ;;  %v906_v44 = vmul.f32 %v905_v42, %v1961_v1  ;;  %v931_v56 = vsub.f32 %v830_v54, %v930_v29 }
 0x6c2   : > { %1465 = vmatmul.mubr.f32.vlgmr.msra.gmra.mrb[6].mxu1 %v832_v52  ;;  %v918_v43 = vadd.f32 %v917_v35, %v1959_v0 }
 0x6c4   : > { %v919_v39 = vsub.f32 %v918_v43, %v1973_v7 }
 0x795   : > { %v901_v53 = vpop.f32.mrb[6].mxu1 }
 0x796   : > { %v902_v34 = vadd.f32 %v901_v53, %v833_v60  ;;  %v1466_v36 = vpop.f32.mrb[7].mxu1 }
 0x798   : > { %v907_v63 = vmul.f32 %v902_v34, %v1963_v2 }
 0x79a   : > { %v908_v37 = vadd.f32 %v907_v63, %v906_v44 }
 0x79c   : > { %v909_v31 = vadd.f32 %v908_v37, %v819_v55 }
 0x79e   : > { %v910_v50 = vsub.f32 %v909_v31, %v822_v38  ;;  %vm912_vm14 = vcmp.ge.f32.partialorder %v909_v31, %v822_v38 }
 0x79f   : > { %v1050_v51 = vsel %vm912_vm14, 1.0, %v1874_v33 }
 0x7a0   : > { %v911_v58 = vmax.f32 %v910_v50, 0.0  ;;  %v915_v26 = vsub.f32 1.0, %v1050_v51  ;;  %v920_v57 = vmul.f32 %v1050_v51, %v919_v39  ;;  %v924_v45 = vmul.f32 %v1050_v51, %v1969_v5  ;;  %101 = sbr.rel (!%p99_p10) target bundleno = 73 (0x49), region = 69 }
 0x7a1   : > { %v928_v41 = vmul.f32 %v1050_v51, %v1967_v4 }
 0x7a2   : > { %v921_v49 = vmul.f32 %v915_v26, %v909_v31  ;;  %v925_v47 = vadd.f32 %v924_v45, %v923_v28   ;;  %v932_v59 = vmul.f32 %v931_v56, %v915_v26  ;;  %v953_v61 = vrot.slane %v911_v58, 1 }
 0x7a3   : > { %v929_v55 = vadd.f32 %v928_v41, %v927_v48  }
 0x7a4   : > { %v922_v30 = vadd.f32 %v921_v49, %v920_v57   ;;  %v933_v33 = vadd.f32 %v1050_v51, %v932_v59   ;;  %v968_v52 = vsel %vm967_vm15, %v966_v62, %v953_v61  ;;  %v2397_v28 = vmov %v925_v47 }
 0x7a5   : > { %970 = vst [vmem:[%s969_s9] sm:$0xff] %v968_v52  ;;  %v2396_v29 = vmov %v929_v55  ;;  %v975_v54 = vrot.slane (%p99_p10), %v925_v47, 6  ;;  %v978_v62 = vrot.slane (%p99_p10), %v929_v55, 5 }
 0x7a6   : > { %v2398_v27 = vmov %v933_v33  ;;  %v2399_v26 = vmov %v922_v30  ;;  %v972_v25 = vrot.slane (%p99_p10), %v933_v33, 7 }
 0x7a8   :  { %v981_v60 = vsel %vm955_vm3, %v922_v30, %v972_v25 }
 0x7a9   :  { %v983_v32 = vsel %vm957_vm5, %v981_v60, %v975_v54 }
 0x7aa   :  { %1786 = shalt.err (!%p1783_p1)
}
 0x7ab   :  { %s1787_s1 = scalar_lea.hbm %s2394_s4, 1024 }
 0x7ac   :  { %p1788_p2 = scmp.ne.s32.totalorder %s2394_s4, %s1787_s1  ;;  %p1791_p3 = scmp.lt.u32.totalorder %s1787_s1, %s2394_s4 }
 0x7ae   :  { %p1793_p4 = pnand %p1791_p3, %p1788_p2 }
 0x7b0   :  { %1796 = shalt.err (!%p1793_p4)
}
 0x7b1   :  { %1000 = dma.vmem_to_hbm [thread:$0]  %s995_s11, 1024, %s2394_s4, [#allocation4], %s1869_s30, %s1869_s30, %s1870_s6   ;;  %v985_v0 = vsel %vm959_vm7, %v983_v32, %v978_v62 }
 0x7b2   :  { %v987_v1 = vsel %vm961_vm9, %v985_v0, 0.0  ;;  %s1797_s24 = scalar_lea.vmem %s1008_s13, 128  ;;  %p1802_p6 = scmp.lt.s32.totalorder %s1008_s13, %s1008_s13 }
 0x7b3   :  { %988 = vst [vmem:[#allocation9] sm:$0xff] %v987_v1  ;;  %p1798_p5 = scmp.ne.s32.totalorder %s1008_s13, %s1797_s24  ;;  %p1803_p7 = scmp.lt.s32.totalorder %s1797_s24, %s1797_s24 }
 0x7b5   :  { %p1804_p8 = por %p1803_p7, %p1802_p6 }
 0x7b7   :  { %p1805_p9 = pnand %p1804_p8, %p1798_p5 }
 0x7b9   :  { %1808 = shalt.err (!%p1805_p9)
}
 0x7ba   :  { %s1809_s27 = scalar_lea.hbm %s2395_s5, 128 }
 0x7bb   :  { %p1810_p10 = scmp.ne.s32.totalorder %s2395_s5, %s1809_s27  ;;  %p1813_p11 = scmp.lt.u32.totalorder %s1809_s27, %s2395_s5 }
 0x7bd   :  { %p1815_p12 = pnand %p1813_p11, %p1810_p10 }
 0x7bf   :  { %1818 = shalt.err (!%p1815_p12)
}
 0x7c0   :  { %1010 = dma.vmem_to_hbm [thread:$0]  %s1008_s13, 128, %s2395_s5, [#allocation10]  }
 0x7c1   :  { %1843 = dma.done.wait [#allocation4], 1024  }
 0x7c2   :  { %1844 = vsyncadd [#allocation4], 4294966272 }
 0x7c3   :  { %1845 = dma.done.wait [#allocation10], 128  }
 0x7c4   :  { %1846 = vsyncadd [#allocation10], 4294967168 }
 0x7c5   :  { %1017 = vsyncpa [#allocation3], 1 }
 0x7c6   :  { %1018 = vsyncpa [#allocation6], 1 }
 0x7c7   :  { %1019 = vsyncpa [#allocation4], 1 }
 0x7c8   :  { %1020 = vsyncpa [#allocation10], 1 }

</bundles_post_ra>
